<compile_context>
chip_gen: v7x
topology: tpu7x:2x2x1
jax: 0.10.0
libtpu: 0.0.40
codegen_flags: <defaults>
</compile_context>

<pallas_src>
import numpy as np
import jax
import jax.numpy as jnp
from jax.experimental import pallas as pl
from jax.experimental.pallas import tpu as pltpu

IN_CH = 8
OUT_CH = 4
MULT = 2
CH_HID = OUT_CH // MULT          # 2  (bottleneck hidden channels)
C_BR = IN_CH // 2                # 4  (per-branch channels; == OUT_CH since pad == 0)
B, H, W = 2, 16, 16
HW = H * W                       # 256 -> lane axis (two full 128-lane vregs wide)
EPS = 1e-5

_TAPS = tuple((dy, dx) for dy in (-1, 0, 1) for dx in (-1, 0, 1))   # ky,kx order
_PATCH_ROWS = 40                 # >= 9*C_BR + 1 (=37), rounded up to a sublane multiple


def irev_block_kernel(x1_ref, x2_ref, w1_ref, w2_ref, w3_ref, y1_ref, patches_ref):
    """One batch element per grid step.  Activations live as (C, H*W) with the
    pixels on lanes.  Each conv+BN+ReLU stage builds its im2col rows (9 rolled
    + edge-masked taps plus a ones row for the folded BN bias) in a small VMEM
    staging buffer and performs a single lane-dense MXU matmul."""

    # Per-pixel (row, col) coordinates for the edge masks (W == 16, power of 2).
    pix = jax.lax.broadcasted_iota(jnp.int32, (1, HW), 1)
    yy = pix >> 4                 # image row of each pixel
    xx = pix & (W - 1)            # image column of each pixel

    def conv_bn_relu(act, w_ref):
        ci = act.shape[0]
        for t, (dy, dx) in enumerate(_TAPS):
            s = dy * W + dx
            # tap[p] = act[p + s]  (jnp.roll semantics: roll by -s), then zero
            # out positions whose 3x3 neighbour fell outside the image (the
            # flattened roll wraps around rows / the whole image).
            tap = act if s == 0 else pltpu.roll(act, shift=(HW - s) % HW, axis=1)
            mask = None
            if dy == -1:
                mask = yy >= 1
            elif dy == 1:
                mask = yy <= H - 2
            if dx == -1:
                mask = (xx >= 1) if mask is None else (mask & (xx >= 1))
            elif dx == 1:
                mask = (xx <= W - 2) if mask is None else (mask & (xx <= W - 2))
            if mask is not None:
                tap = jnp.where(mask, tap, 0.0)
            patches_ref[pl.ds(t * ci, ci), :] = tap          # full-lane-width store
        # Ones row: the folded BN shift sits in the last weight column.
        patches_ref[pl.ds(9 * ci, 1), :] = jnp.ones((1, HW), jnp.float32)
        k = 9 * ci + 1
        out = jnp.dot(w_ref[...], patches_ref[pl.ds(0, k), :],
                      preferred_element_type=jnp.float32)    # (Co, HW), lane dense
        return jnp.maximum(out, 0.0)

    x2 = x2_ref[0]                            # (C_BR, HW)
    h = conv_bn_relu(x2, w1_ref)              # (CH_HID, HW)
    # Dropout(p=0.0) is the identity -> nothing to do.
    h = conv_bn_relu(h, w2_ref)               # (CH_HID, HW)
    f = conv_bn_relu(h, w3_ref)               # (OUT_CH, HW)
    y1_ref[0] = f + x1_ref[0]                 # residual add, unmasked 256-lane store


def _build_pallas_call():
    x_spec = pl.BlockSpec((1, C_BR, HW), lambda b: (b, 0, 0))

    def w_spec(co, ci):
        return pl.BlockSpec((co, 9 * ci + 1), lambda b: (0, 0))

    return pl.pallas_call(
        irev_block_kernel,
        out_shape=jax.ShapeDtypeStruct((B, OUT_CH, HW), jnp.float32),
        grid_spec=pltpu.PrefetchScalarGridSpec(
            num_scalar_prefetch=0,
            grid=(B,),
            in_specs=[x_spec, x_spec,
                      w_spec(CH_HID, C_BR),
                      w_spec(CH_HID, CH_HID),
                      w_spec(OUT_CH, CH_HID)],
            out_specs=pl.BlockSpec((1, OUT_CH, HW), lambda b: (b, 0, 0)),
            scratch_shapes=[pltpu.VMEM((_PATCH_ROWS, HW), jnp.float32)]),
        compiler_params=pltpu.CompilerParams(
            dimension_semantics=("parallel",)),   # 2 TCs on v7x; serial elsewhere
    )


def _fold_conv_bn_bias(w, bn):
    """conv(3,3,Ci,Co) + inference BN -> (Co, 9*Ci + 1) matrix.
    BN scale is folded into the weights, BN shift becomes the last column
    (multiplied in-kernel by a ones row)."""
    gamma, beta, mean, var = bn
    scale = gamma / jnp.sqrt(var + EPS)          # (Co,)
    shift = beta - mean * scale                  # (Co,)
    wf = w * scale                               # broadcast over Co (last dim)
    ci, co = w.shape[2], w.shape[3]
    w_hat = jnp.transpose(wf, (3, 0, 1, 2)).reshape(co, 9 * ci)   # (Co, 9*Ci), tap-major
    return jnp.concatenate([w_hat, shift[:, None]], axis=1).astype(jnp.float32)


def init_params(key):
    ks = jax.random.split(key, 6)
    w1 = (0.1 * jax.random.normal(ks[0], (3, 3, C_BR, CH_HID))).astype(jnp.float32)
    w2 = (0.1 * jax.random.normal(ks[1], (3, 3, CH_HID, CH_HID))).astype(jnp.float32)
    w3 = (0.1 * jax.random.normal(ks[2], (3, 3, CH_HID, OUT_CH))).astype(jnp.float32)

    def bn(k, c):
        kg, kb, km, kv = jax.random.split(k, 4)
        gamma = jax.random.uniform(kg, (c,), minval=0.5, maxval=1.5).astype(jnp.float32)
        beta = (0.1 * jax.random.normal(kb, (c,))).astype(jnp.float32)
        mean = (0.1 * jax.random.normal(km, (c,))).astype(jnp.float32)
        var = jax.random.uniform(kv, (c,), minval=0.5, maxval=1.5).astype(jnp.float32)
        return (gamma, beta, mean, var)

    return (w1, w2, w3, bn(ks[3], CH_HID), bn(ks[4], CH_HID), bn(ks[5], OUT_CH))


def irevnet_block_forward(x1_nchw, x2_nchw, params):
    """Mirrors irevnet_block.forward((x1, x2)) -> (x2, Fx2 + x1), NCHW in/out."""
    w1, w2, w3, bn1, bn2, bn3 = params
    w1a = _fold_conv_bn_bias(w1, bn1)
    w2a = _fold_conv_bn_bias(w2, bn2)
    w3a = _fold_conv_bn_bias(w3, bn3)
    # Flattened NCHW == (B, C, H*W): no transposes needed, lane-dense last dim.
    x1 = x1_nchw.reshape(B, C_BR, HW).astype(jnp.float32)
    x2 = x2_nchw.reshape(B, C_BR, HW).astype(jnp.float32)
    y1 = _build_pallas_call()(x1, x2, w1a, w2a, w3a)
    # x2 passes through untouched: return the caller's tensor, no kernel copy.
    return x2_nchw, y1.reshape(B, OUT_CH, H, W)


def _reference_forward(x1_nchw, x2_nchw, params):
    """Pure-JAX (XLA conv) reference for validation."""
    w1, w2, w3, bn1, bn2, bn3 = params
    x1 = jnp.transpose(x1_nchw, (0, 2, 3, 1)).astype(jnp.float32)
    x2 = jnp.transpose(x2_nchw, (0, 2, 3, 1)).astype(jnp.float32)

    def conv(x, w):
        return jax.lax.conv_general_dilated(
            x, w, window_strides=(1, 1), padding='SAME',
            dimension_numbers=('NHWC', 'HWIO', 'NHWC'))

    def bnrelu(x, bn):
        gamma, beta, mean, var = bn
        return jnp.maximum((x - mean) * (gamma / jnp.sqrt(var + EPS)) + beta, 0.0)

    h = bnrelu(conv(x2, w1), bn1)
    h = bnrelu(conv(h, w2), bn2)
    f = bnrelu(conv(h, w3), bn3)
    y1 = f + x1
    return x2_nchw, jnp.transpose(y1, (0, 3, 1, 2))


if __name__ == "__main__":
    key = jax.random.PRNGKey(0)
    k1, k2, kp = jax.random.split(key, 3)
    # forward() input is the tuple (x1, x2), each NCHW (B, in_ch//2, H, W)
    x1 = jax.random.normal(k1, (B, C_BR, H, W), dtype=jnp.float32)
    x2 = jax.random.normal(k2, (B, C_BR, H, W), dtype=jnp.float32)
    params = init_params(kp)

    out_x2, out_y1 = irevnet_block_forward(x1, x2, params)
    out_x2 = jax.block_until_ready(out_x2)
    out_y1 = jax.block_until_ready(out_y1)

    ref_x2, ref_y1 = _reference_forward(x1, x2, params)
    np.testing.assert_allclose(np.asarray(out_x2), np.asarray(ref_x2), atol=1e-5, rtol=1e-5)
    np.testing.assert_allclose(np.asarray(out_y1), np.asarray(ref_y1), atol=2e-4, rtol=2e-4)

    print("KERNEL_OK")
</pallas_src>

<mosaic_0001>
module attributes {stable_mosaic.version = 11 : i64} {
  func.func @irev_block_kernel(%arg0: i32, %arg1: memref<1x4x256xf32, #tpu.memory_space<vmem>>, %arg2: memref<1x4x256xf32, #tpu.memory_space<vmem>>, %arg3: memref<2x37xf32, #tpu.memory_space<vmem>>, %arg4: memref<2x19xf32, #tpu.memory_space<vmem>>, %arg5: memref<4x19xf32, #tpu.memory_space<vmem>>, %arg6: memref<1x4x256xf32, #tpu.memory_space<vmem>>, %arg7: memref<40x256xf32, #tpu.memory_space<vmem>>) attributes {dimension_semantics = [#tpu.dimension_semantics<parallel>], iteration_bounds = array<i64: 2>, scalar_prefetch = 0 : i64, scratch_operands = 1 : i64, tpu.core_type = #tpu.core_type<tc>, window_params = [{transform_indices = @transform_0, window_bounds = array<i64: 1, 4, 256>}, {transform_indices = @transform_1, window_bounds = array<i64: 1, 4, 256>}, {pipeline_mode = #tpu.pipeline_mode<synchronous>, transform_indices = @transform_2, window_bounds = array<i64: 2, 37>}, {pipeline_mode = #tpu.pipeline_mode<synchronous>, transform_indices = @transform_3, window_bounds = array<i64: 2, 19>}, {pipeline_mode = #tpu.pipeline_mode<synchronous>, transform_indices = @transform_4, window_bounds = array<i64: 4, 19>}, {transform_indices = @transform_5, window_bounds = array<i64: 1, 4, 256>}]} {
    %0 = tpu.iota {dimensions = array<i32: 1>} : vector<1x256xi32>
    %c4_i32 = arith.constant 4 : i32
    %1 = vector.broadcast %c4_i32 : i32 to vector<1x256xi32>
    %2 = arith.shrsi %0, %1 : vector<1x256xi32>
    %c15_i32 = arith.constant 15 : i32
    %3 = vector.broadcast %c15_i32 : i32 to vector<1x256xi32>
    %4 = arith.andi %0, %3 : vector<1x256xi32>
    %c0 = arith.constant 0 : index
    %c0_0 = arith.constant 0 : index
    %c0_1 = arith.constant 0 : index
    %5 = vector.load %arg2[%c0, %c0_0, %c0_1] : memref<1x4x256xf32, #tpu.memory_space<vmem>>, vector<1x4x256xf32>
    %6 = vector.shape_cast %5 : vector<1x4x256xf32> to vector<4x256xf32>
    %c17_i32 = arith.constant 17 : i32
    %7 = tpu.dynamic_rotate %6 by %c17_i32 dim 1 : vector<4x256xf32>, i32 -> vector<4x256xf32>
    %c1_i32 = arith.constant 1 : i32
    %8 = vector.broadcast %c1_i32 : i32 to vector<1x256xi32>
    %9 = arith.cmpi sge, %2, %8 : vector<1x256xi32>
    %c1_i32_2 = arith.constant 1 : i32
    %10 = vector.broadcast %c1_i32_2 : i32 to vector<1x256xi32>
    %11 = arith.cmpi sge, %4, %10 : vector<1x256xi32>
    %12 = arith.andi %9, %11 : vector<1x256xi1>
    %cst = arith.constant 0.000000e+00 : f32
    %13 = vector.shape_cast %12 : vector<1x256xi1> to vector<1x256xi1>
    %14 = vector.broadcast %13 : vector<1x256xi1> to vector<4x256xi1>
    %15 = vector.broadcast %cst : f32 to vector<4x256xf32>
    %16 = arith.select %14, %7, %15 : vector<4x256xi1>, vector<4x256xf32>
    %c0_3 = arith.constant 0 : index
    %c0_4 = arith.constant 0 : index
    %17 = vector.load %arg7[%c0_3, %c0_4] : memref<40x256xf32, #tpu.memory_space<vmem>>, vector<4x256xf32>
    tpu.vector_store %arg7[%c0_3, %c0_4], %16 {strides = array<i32>} : memref<40x256xf32, #tpu.memory_space<vmem>>, vector<4x256xf32>,
    %c16_i32 = arith.constant 16 : i32
    %18 = tpu.dynamic_rotate %6 by %c16_i32 dim 1 : vector<4x256xf32>, i32 -> vector<4x256xf32>
    %c1_i32_5 = arith.constant 1 : i32
    %19 = vector.broadcast %c1_i32_5 : i32 to vector<1x256xi32>
    %20 = arith.cmpi sge, %2, %19 : vector<1x256xi32>
    %cst_6 = arith.constant 0.000000e+00 : f32
    %21 = vector.shape_cast %20 : vector<1x256xi1> to vector<1x256xi1>
    %22 = vector.broadcast %21 : vector<1x256xi1> to vector<4x256xi1>
    %23 = vector.broadcast %cst_6 : f32 to vector<4x256xf32>
    %24 = arith.select %22, %18, %23 : vector<4x256xi1>, vector<4x256xf32>
    %c4 = arith.constant 4 : index
    %c0_7 = arith.constant 0 : index
    %25 = vector.load %arg7[%c4, %c0_7] : memref<40x256xf32, #tpu.memory_space<vmem>>, vector<4x256xf32>
    tpu.vector_store %arg7[%c4, %c0_7], %24 {strides = array<i32>} : memref<40x256xf32, #tpu.memory_space<vmem>>, vector<4x256xf32>,
    %c15_i32_8 = arith.constant 15 : i32
    %26 = tpu.dynamic_rotate %6 by %c15_i32_8 dim 1 : vector<4x256xf32>, i32 -> vector<4x256xf32>
    %c1_i32_9 = arith.constant 1 : i32
    %27 = vector.broadcast %c1_i32_9 : i32 to vector<1x256xi32>
    %28 = arith.cmpi sge, %2, %27 : vector<1x256xi32>
    %c14_i32 = arith.constant 14 : i32
    %29 = vector.broadcast %c14_i32 : i32 to vector<1x256xi32>
    %30 = arith.cmpi sle, %4, %29 : vector<1x256xi32>
    %31 = arith.andi %28, %30 : vector<1x256xi1>
    %cst_10 = arith.constant 0.000000e+00 : f32
    %32 = vector.shape_cast %31 : vector<1x256xi1> to vector<1x256xi1>
    %33 = vector.broadcast %32 : vector<1x256xi1> to vector<4x256xi1>
    %34 = vector.broadcast %cst_10 : f32 to vector<4x256xf32>
    %35 = arith.select %33, %26, %34 : vector<4x256xi1>, vector<4x256xf32>
    %c8 = arith.constant 8 : index
    %c0_11 = arith.constant 0 : index
    %36 = vector.load %arg7[%c8, %c0_11] : memref<40x256xf32, #tpu.memory_space<vmem>>, vector<4x256xf32>
    tpu.vector_store %arg7[%c8, %c0_11], %35 {strides = array<i32>} : memref<40x256xf32, #tpu.memory_space<vmem>>, vector<4x256xf32>,
    %c1_i32_12 = arith.constant 1 : i32
    %37 = tpu.dynamic_rotate %6 by %c1_i32_12 dim 1 : vector<4x256xf32>, i32 -> vector<4x256xf32>
    %c1_i32_13 = arith.constant 1 : i32
    %38 = vector.broadcast %c1_i32_13 : i32 to vector<1x256xi32>
    %39 = arith.cmpi sge, %4, %38 : vector<1x256xi32>
    %cst_14 = arith.constant 0.000000e+00 : f32
    %40 = vector.shape_cast %39 : vector<1x256xi1> to vector<1x256xi1>
    %41 = vector.broadcast %40 : vector<1x256xi1> to vector<4x256xi1>
    %42 = vector.broadcast %cst_14 : f32 to vector<4x256xf32>
    %43 = arith.select %41, %37, %42 : vector<4x256xi1>, vector<4x256xf32>
    %c12 = arith.constant 12 : index
    %c0_15 = arith.constant 0 : index
    %44 = vector.load %arg7[%c12, %c0_15] : memref<40x256xf32, #tpu.memory_space<vmem>>, vector<4x256xf32>
    tpu.vector_store %arg7[%c12, %c0_15], %43 {strides = array<i32>} : memref<40x256xf32, #tpu.memory_space<vmem>>, vector<4x256xf32>,
    %c16 = arith.constant 16 : index
    %c0_16 = arith.constant 0 : index
    %45 = vector.load %arg7[%c16, %c0_16] : memref<40x256xf32, #tpu.memory_space<vmem>>, vector<4x256xf32>
    tpu.vector_store %arg7[%c16, %c0_16], %6 {strides = array<i32>} : memref<40x256xf32, #tpu.memory_space<vmem>>, vector<4x256xf32>,
    %c255_i32 = arith.constant 255 : i32
    %46 = tpu.dynamic_rotate %6 by %c255_i32 dim 1 : vector<4x256xf32>, i32 -> vector<4x256xf32>
    %c14_i32_17 = arith.constant 14 : i32
    %47 = vector.broadcast %c14_i32_17 : i32 to vector<1x256xi32>
    %48 = arith.cmpi sle, %4, %47 : vector<1x256xi32>
    %cst_18 = arith.constant 0.000000e+00 : f32
    %49 = vector.shape_cast %48 : vector<1x256xi1> to vector<1x256xi1>
    %50 = vector.broadcast %49 : vector<1x256xi1> to vector<4x256xi1>
    %51 = vector.broadcast %cst_18 : f32 to vector<4x256xf32>
    %52 = arith.select %50, %46, %51 : vector<4x256xi1>, vector<4x256xf32>
    %c20 = arith.constant 20 : index
    %c0_19 = arith.constant 0 : index
    %53 = vector.load %arg7[%c20, %c0_19] : memref<40x256xf32, #tpu.memory_space<vmem>>, vector<4x256xf32>
    tpu.vector_store %arg7[%c20, %c0_19], %52 {strides = array<i32>} : memref<40x256xf32, #tpu.memory_space<vmem>>, vector<4x256xf32>,
    %c241_i32 = arith.constant 241 : i32
    %54 = tpu.dynamic_rotate %6 by %c241_i32 dim 1 : vector<4x256xf32>, i32 -> vector<4x256xf32>
    %c14_i32_20 = arith.constant 14 : i32
    %55 = vector.broadcast %c14_i32_20 : i32 to vector<1x256xi32>
    %56 = arith.cmpi sle, %2, %55 : vector<1x256xi32>
    %c1_i32_21 = arith.constant 1 : i32
    %57 = vector.broadcast %c1_i32_21 : i32 to vector<1x256xi32>
    %58 = arith.cmpi sge, %4, %57 : vector<1x256xi32>
    %59 = arith.andi %56, %58 : vector<1x256xi1>
    %cst_22 = arith.constant 0.000000e+00 : f32
    %60 = vector.shape_cast %59 : vector<1x256xi1> to vector<1x256xi1>
    %61 = vector.broadcast %60 : vector<1x256xi1> to vector<4x256xi1>
    %62 = vector.broadcast %cst_22 : f32 to vector<4x256xf32>
    %63 = arith.select %61, %54, %62 : vector<4x256xi1>, vector<4x256xf32>
    %c24 = arith.constant 24 : index
    %c0_23 = arith.constant 0 : index
    %64 = vector.load %arg7[%c24, %c0_23] : memref<40x256xf32, #tpu.memory_space<vmem>>, vector<4x256xf32>
    tpu.vector_store %arg7[%c24, %c0_23], %63 {strides = array<i32>} : memref<40x256xf32, #tpu.memory_space<vmem>>, vector<4x256xf32>,
    %c240_i32 = arith.constant 240 : i32
    %65 = tpu.dynamic_rotate %6 by %c240_i32 dim 1 : vector<4x256xf32>, i32 -> vector<4x256xf32>
    %c14_i32_24 = arith.constant 14 : i32
    %66 = vector.broadcast %c14_i32_24 : i32 to vector<1x256xi32>
    %67 = arith.cmpi sle, %2, %66 : vector<1x256xi32>
    %cst_25 = arith.constant 0.000000e+00 : f32
    %68 = vector.shape_cast %67 : vector<1x256xi1> to vector<1x256xi1>
    %69 = vector.broadcast %68 : vector<1x256xi1> to vector<4x256xi1>
    %70 = vector.broadcast %cst_25 : f32 to vector<4x256xf32>
    %71 = arith.select %69, %65, %70 : vector<4x256xi1>, vector<4x256xf32>
    %c28 = arith.constant 28 : index
    %c0_26 = arith.constant 0 : index
    %72 = vector.load %arg7[%c28, %c0_26] : memref<40x256xf32, #tpu.memory_space<vmem>>, vector<4x256xf32>
    tpu.vector_store %arg7[%c28, %c0_26], %71 {strides = array<i32>} : memref<40x256xf32, #tpu.memory_space<vmem>>, vector<4x256xf32>,
    %c239_i32 = arith.constant 239 : i32
    %73 = tpu.dynamic_rotate %6 by %c239_i32 dim 1 : vector<4x256xf32>, i32 -> vector<4x256xf32>
    %c14_i32_27 = arith.constant 14 : i32
    %74 = vector.broadcast %c14_i32_27 : i32 to vector<1x256xi32>
    %75 = arith.cmpi sle, %2, %74 : vector<1x256xi32>
    %c14_i32_28 = arith.constant 14 : i32
    %76 = vector.broadcast %c14_i32_28 : i32 to vector<1x256xi32>
    %77 = arith.cmpi sle, %4, %76 : vector<1x256xi32>
    %78 = arith.andi %75, %77 : vector<1x256xi1>
    %cst_29 = arith.constant 0.000000e+00 : f32
    %79 = vector.shape_cast %78 : vector<1x256xi1> to vector<1x256xi1>
    %80 = vector.broadcast %79 : vector<1x256xi1> to vector<4x256xi1>
    %81 = vector.broadcast %cst_29 : f32 to vector<4x256xf32>
    %82 = arith.select %80, %73, %81 : vector<4x256xi1>, vector<4x256xf32>
    %c32 = arith.constant 32 : index
    %c0_30 = arith.constant 0 : index
    %83 = vector.load %arg7[%c32, %c0_30] : memref<40x256xf32, #tpu.memory_space<vmem>>, vector<4x256xf32>
    tpu.vector_store %arg7[%c32, %c0_30], %82 {strides = array<i32>} : memref<40x256xf32, #tpu.memory_space<vmem>>, vector<4x256xf32>,
    %cst_31 = arith.constant 1.000000e+00 : f32
    %84 = vector.broadcast %cst_31 : f32 to vector<1x256xf32>
    %c36 = arith.constant 36 : index
    %c0_32 = arith.constant 0 : index
    %85 = vector.load %arg7[%c36, %c0_32] : memref<40x256xf32, #tpu.memory_space<vmem>>, vector<1x256xf32>
    tpu.vector_store %arg7[%c36, %c0_32], %84 {strides = array<i32>} : memref<40x256xf32, #tpu.memory_space<vmem>>, vector<1x256xf32>,
    %c0_33 = arith.constant 0 : index
    %c0_34 = arith.constant 0 : index
    %86 = vector.load %arg3[%c0_33, %c0_34] : memref<2x37xf32, #tpu.memory_space<vmem>>, vector<2x37xf32>
    %c0_35 = arith.constant 0 : index
    %c0_36 = arith.constant 0 : index
    %87 = vector.load %arg7[%c0_35, %c0_36] : memref<40x256xf32, #tpu.memory_space<vmem>>, vector<37x256xf32>
    %cst_37 = arith.constant dense<0.000000e+00> : vector<2x256xf32>
    %88 = tpu.matmul %86, %87, %cst_37 {dimension_numbers = #tpu.dot_dimension_numbers<[1], [0], [0], [1], [0, 0, 1, 1], [], []>} : vector<2x37xf32>, vector<37x256xf32>, vector<2x256xf32> -> vector<2x256xf32>
    %cst_38 = arith.constant 0.000000e+00 : f32
    %89 = vector.broadcast %cst_38 : f32 to vector<2x256xf32>
    %90 = arith.maximumf %88, %89 : vector<2x256xf32>
    %c17_i32_39 = arith.constant 17 : i32
    %91 = tpu.dynamic_rotate %90 by %c17_i32_39 dim 1 : vector<2x256xf32>, i32 -> vector<2x256xf32>
    %c1_i32_40 = arith.constant 1 : i32
    %92 = vector.broadcast %c1_i32_40 : i32 to vector<1x256xi32>
    %93 = arith.cmpi sge, %2, %92 : vector<1x256xi32>
    %c1_i32_41 = arith.constant 1 : i32
    %94 = vector.broadcast %c1_i32_41 : i32 to vector<1x256xi32>
    %95 = arith.cmpi sge, %4, %94 : vector<1x256xi32>
    %96 = arith.andi %93, %95 : vector<1x256xi1>
    %cst_42 = arith.constant 0.000000e+00 : f32
    %97 = vector.shape_cast %96 : vector<1x256xi1> to vector<1x256xi1>
    %98 = vector.broadcast %97 : vector<1x256xi1> to vector<2x256xi1>
    %99 = vector.broadcast %cst_42 : f32 to vector<2x256xf32>
    %100 = arith.select %98, %91, %99 : vector<2x256xi1>, vector<2x256xf32>
    %c0_43 = arith.constant 0 : index
    %c0_44 = arith.constant 0 : index
    %101 = vector.load %arg7[%c0_43, %c0_44] : memref<40x256xf32, #tpu.memory_space<vmem>>, vector<2x256xf32>
    tpu.vector_store %arg7[%c0_43, %c0_44], %100 {strides = array<i32>} : memref<40x256xf32, #tpu.memory_space<vmem>>, vector<2x256xf32>,
    %c16_i32_45 = arith.constant 16 : i32
    %102 = tpu.dynamic_rotate %90 by %c16_i32_45 dim 1 : vector<2x256xf32>, i32 -> vector<2x256xf32>
    %c1_i32_46 = arith.constant 1 : i32
    %103 = vector.broadcast %c1_i32_46 : i32 to vector<1x256xi32>
    %104 = arith.cmpi sge, %2, %103 : vector<1x256xi32>
    %cst_47 = arith.constant 0.000000e+00 : f32
    %105 = vector.shape_cast %104 : vector<1x256xi1> to vector<1x256xi1>
    %106 = vector.broadcast %105 : vector<1x256xi1> to vector<2x256xi1>
    %107 = vector.broadcast %cst_47 : f32 to vector<2x256xf32>
    %108 = arith.select %106, %102, %107 : vector<2x256xi1>, vector<2x256xf32>
    %c2 = arith.constant 2 : index
    %c0_48 = arith.constant 0 : index
    %109 = vector.load %arg7[%c2, %c0_48] : memref<40x256xf32, #tpu.memory_space<vmem>>, vector<2x256xf32>
    tpu.vector_store %arg7[%c2, %c0_48], %108 {strides = array<i32>} : memref<40x256xf32, #tpu.memory_space<vmem>>, vector<2x256xf32>,
    %c15_i32_49 = arith.constant 15 : i32
    %110 = tpu.dynamic_rotate %90 by %c15_i32_49 dim 1 : vector<2x256xf32>, i32 -> vector<2x256xf32>
    %c1_i32_50 = arith.constant 1 : i32
    %111 = vector.broadcast %c1_i32_50 : i32 to vector<1x256xi32>
    %112 = arith.cmpi sge, %2, %111 : vector<1x256xi32>
    %c14_i32_51 = arith.constant 14 : i32
    %113 = vector.broadcast %c14_i32_51 : i32 to vector<1x256xi32>
    %114 = arith.cmpi sle, %4, %113 : vector<1x256xi32>
    %115 = arith.andi %112, %114 : vector<1x256xi1>
    %cst_52 = arith.constant 0.000000e+00 : f32
    %116 = vector.shape_cast %115 : vector<1x256xi1> to vector<1x256xi1>
    %117 = vector.broadcast %116 : vector<1x256xi1> to vector<2x256xi1>
    %118 = vector.broadcast %cst_52 : f32 to vector<2x256xf32>
    %119 = arith.select %117, %110, %118 : vector<2x256xi1>, vector<2x256xf32>
    %c4_53 = arith.constant 4 : index
    %c0_54 = arith.constant 0 : index
    %120 = vector.load %arg7[%c4_53, %c0_54] : memref<40x256xf32, #tpu.memory_space<vmem>>, vector<2x256xf32>
    tpu.vector_store %arg7[%c4_53, %c0_54], %119 {strides = array<i32>} : memref<40x256xf32, #tpu.memory_space<vmem>>, vector<2x256xf32>,
    %c1_i32_55 = arith.constant 1 : i32
    %121 = tpu.dynamic_rotate %90 by %c1_i32_55 dim 1 : vector<2x256xf32>, i32 -> vector<2x256xf32>
    %c1_i32_56 = arith.constant 1 : i32
    %122 = vector.broadcast %c1_i32_56 : i32 to vector<1x256xi32>
    %123 = arith.cmpi sge, %4, %122 : vector<1x256xi32>
    %cst_57 = arith.constant 0.000000e+00 : f32
    %124 = vector.shape_cast %123 : vector<1x256xi1> to vector<1x256xi1>
    %125 = vector.broadcast %124 : vector<1x256xi1> to vector<2x256xi1>
    %126 = vector.broadcast %cst_57 : f32 to vector<2x256xf32>
    %127 = arith.select %125, %121, %126 : vector<2x256xi1>, vector<2x256xf32>
    %c6 = arith.constant 6 : index
    %c0_58 = arith.constant 0 : index
    %128 = vector.load %arg7[%c6, %c0_58] : memref<40x256xf32, #tpu.memory_space<vmem>>, vector<2x256xf32>
    tpu.vector_store %arg7[%c6, %c0_58], %127 {strides = array<i32>} : memref<40x256xf32, #tpu.memory_space<vmem>>, vector<2x256xf32>,
    %c8_59 = arith.constant 8 : index
    %c0_60 = arith.constant 0 : index
    %129 = vector.load %arg7[%c8_59, %c0_60] : memref<40x256xf32, #tpu.memory_space<vmem>>, vector<2x256xf32>
    tpu.vector_store %arg7[%c8_59, %c0_60], %90 {strides = array<i32>} : memref<40x256xf32, #tpu.memory_space<vmem>>, vector<2x256xf32>,
    %c255_i32_61 = arith.constant 255 : i32
    %130 = tpu.dynamic_rotate %90 by %c255_i32_61 dim 1 : vector<2x256xf32>, i32 -> vector<2x256xf32>
    %c14_i32_62 = arith.constant 14 : i32
    %131 = vector.broadcast %c14_i32_62 : i32 to vector<1x256xi32>
    %132 = arith.cmpi sle, %4, %131 : vector<1x256xi32>
    %cst_63 = arith.constant 0.000000e+00 : f32
    %133 = vector.shape_cast %132 : vector<1x256xi1> to vector<1x256xi1>
    %134 = vector.broadcast %133 : vector<1x256xi1> to vector<2x256xi1>
    %135 = vector.broadcast %cst_63 : f32 to vector<2x256xf32>
    %136 = arith.select %134, %130, %135 : vector<2x256xi1>, vector<2x256xf32>
    %c10 = arith.constant 10 : index
    %c0_64 = arith.constant 0 : index
    %137 = vector.load %arg7[%c10, %c0_64] : memref<40x256xf32, #tpu.memory_space<vmem>>, vector<2x256xf32>
    tpu.vector_store %arg7[%c10, %c0_64], %136 {strides = array<i32>} : memref<40x256xf32, #tpu.memory_space<vmem>>, vector<2x256xf32>,
    %c241_i32_65 = arith.constant 241 : i32
    %138 = tpu.dynamic_rotate %90 by %c241_i32_65 dim 1 : vector<2x256xf32>, i32 -> vector<2x256xf32>
    %c14_i32_66 = arith.constant 14 : i32
    %139 = vector.broadcast %c14_i32_66 : i32 to vector<1x256xi32>
    %140 = arith.cmpi sle, %2, %139 : vector<1x256xi32>
    %c1_i32_67 = arith.constant 1 : i32
    %141 = vector.broadcast %c1_i32_67 : i32 to vector<1x256xi32>
    %142 = arith.cmpi sge, %4, %141 : vector<1x256xi32>
    %143 = arith.andi %140, %142 : vector<1x256xi1>
    %cst_68 = arith.constant 0.000000e+00 : f32
    %144 = vector.shape_cast %143 : vector<1x256xi1> to vector<1x256xi1>
    %145 = vector.broadcast %144 : vector<1x256xi1> to vector<2x256xi1>
    %146 = vector.broadcast %cst_68 : f32 to vector<2x256xf32>
    %147 = arith.select %145, %138, %146 : vector<2x256xi1>, vector<2x256xf32>
    %c12_69 = arith.constant 12 : index
    %c0_70 = arith.constant 0 : index
    %148 = vector.load %arg7[%c12_69, %c0_70] : memref<40x256xf32, #tpu.memory_space<vmem>>, vector<2x256xf32>
    tpu.vector_store %arg7[%c12_69, %c0_70], %147 {strides = array<i32>} : memref<40x256xf32, #tpu.memory_space<vmem>>, vector<2x256xf32>,
    %c240_i32_71 = arith.constant 240 : i32
    %149 = tpu.dynamic_rotate %90 by %c240_i32_71 dim 1 : vector<2x256xf32>, i32 -> vector<2x256xf32>
    %c14_i32_72 = arith.constant 14 : i32
    %150 = vector.broadcast %c14_i32_72 : i32 to vector<1x256xi32>
    %151 = arith.cmpi sle, %2, %150 : vector<1x256xi32>
    %cst_73 = arith.constant 0.000000e+00 : f32
    %152 = vector.shape_cast %151 : vector<1x256xi1> to vector<1x256xi1>
    %153 = vector.broadcast %152 : vector<1x256xi1> to vector<2x256xi1>
    %154 = vector.broadcast %cst_73 : f32 to vector<2x256xf32>
    %155 = arith.select %153, %149, %154 : vector<2x256xi1>, vector<2x256xf32>
    %c14 = arith.constant 14 : index
    %c0_74 = arith.constant 0 : index
    %156 = vector.load %arg7[%c14, %c0_74] : memref<40x256xf32, #tpu.memory_space<vmem>>, vector<2x256xf32>
    tpu.vector_store %arg7[%c14, %c0_74], %155 {strides = array<i32>} : memref<40x256xf32, #tpu.memory_space<vmem>>, vector<2x256xf32>,
    %c239_i32_75 = arith.constant 239 : i32
    %157 = tpu.dynamic_rotate %90 by %c239_i32_75 dim 1 : vector<2x256xf32>, i32 -> vector<2x256xf32>
    %c14_i32_76 = arith.constant 14 : i32
    %158 = vector.broadcast %c14_i32_76 : i32 to vector<1x256xi32>
    %159 = arith.cmpi sle, %2, %158 : vector<1x256xi32>
    %c14_i32_77 = arith.constant 14 : i32
    %160 = vector.broadcast %c14_i32_77 : i32 to vector<1x256xi32>
    %161 = arith.cmpi sle, %4, %160 : vector<1x256xi32>
    %162 = arith.andi %159, %161 : vector<1x256xi1>
    %cst_78 = arith.constant 0.000000e+00 : f32
    %163 = vector.shape_cast %162 : vector<1x256xi1> to vector<1x256xi1>
    %164 = vector.broadcast %163 : vector<1x256xi1> to vector<2x256xi1>
    %165 = vector.broadcast %cst_78 : f32 to vector<2x256xf32>
    %166 = arith.select %164, %157, %165 : vector<2x256xi1>, vector<2x256xf32>
    %c16_79 = arith.constant 16 : index
    %c0_80 = arith.constant 0 : index
    %167 = vector.load %arg7[%c16_79, %c0_80] : memref<40x256xf32, #tpu.memory_space<vmem>>, vector<2x256xf32>
    tpu.vector_store %arg7[%c16_79, %c0_80], %166 {strides = array<i32>} : memref<40x256xf32, #tpu.memory_space<vmem>>, vector<2x256xf32>,
    %cst_81 = arith.constant 1.000000e+00 : f32
    %168 = vector.broadcast %cst_81 : f32 to vector<1x256xf32>
    %c18 = arith.constant 18 : index
    %c0_82 = arith.constant 0 : index
    %169 = vector.load %arg7[%c18, %c0_82] : memref<40x256xf32, #tpu.memory_space<vmem>>, vector<1x256xf32>
    tpu.vector_store %arg7[%c18, %c0_82], %168 {strides = array<i32>} : memref<40x256xf32, #tpu.memory_space<vmem>>, vector<1x256xf32>,
    %c0_83 = arith.constant 0 : index
    %c0_84 = arith.constant 0 : index
    %170 = vector.load %arg4[%c0_83, %c0_84] : memref<2x19xf32, #tpu.memory_space<vmem>>, vector<2x19xf32>
    %c0_85 = arith.constant 0 : index
    %c0_86 = arith.constant 0 : index
    %171 = vector.load %arg7[%c0_85, %c0_86] : memref<40x256xf32, #tpu.memory_space<vmem>>, vector<19x256xf32>
    %cst_87 = arith.constant dense<0.000000e+00> : vector<2x256xf32>
    %172 = tpu.matmul %170, %171, %cst_87 {dimension_numbers = #tpu.dot_dimension_numbers<[1], [0], [0], [1], [0, 0, 1, 1], [], []>} : vector<2x19xf32>, vector<19x256xf32>, vector<2x256xf32> -> vector<2x256xf32>
    %cst_88 = arith.constant 0.000000e+00 : f32
    %173 = vector.broadcast %cst_88 : f32 to vector<2x256xf32>
    %174 = arith.maximumf %172, %173 : vector<2x256xf32>
    %c17_i32_89 = arith.constant 17 : i32
    %175 = tpu.dynamic_rotate %174 by %c17_i32_89 dim 1 : vector<2x256xf32>, i32 -> vector<2x256xf32>
    %c1_i32_90 = arith.constant 1 : i32
    %176 = vector.broadcast %c1_i32_90 : i32 to vector<1x256xi32>
    %177 = arith.cmpi sge, %2, %176 : vector<1x256xi32>
    %c1_i32_91 = arith.constant 1 : i32
    %178 = vector.broadcast %c1_i32_91 : i32 to vector<1x256xi32>
    %179 = arith.cmpi sge, %4, %178 : vector<1x256xi32>
    %180 = arith.andi %177, %179 : vector<1x256xi1>
    %cst_92 = arith.constant 0.000000e+00 : f32
    %181 = vector.shape_cast %180 : vector<1x256xi1> to vector<1x256xi1>
    %182 = vector.broadcast %181 : vector<1x256xi1> to vector<2x256xi1>
    %183 = vector.broadcast %cst_92 : f32 to vector<2x256xf32>
    %184 = arith.select %182, %175, %183 : vector<2x256xi1>, vector<2x256xf32>
    %c0_93 = arith.constant 0 : index
    %c0_94 = arith.constant 0 : index
    %185 = vector.load %arg7[%c0_93, %c0_94] : memref<40x256xf32, #tpu.memory_space<vmem>>, vector<2x256xf32>
    tpu.vector_store %arg7[%c0_93, %c0_94], %184 {strides = array<i32>} : memref<40x256xf32, #tpu.memory_space<vmem>>, vector<2x256xf32>,
    %c16_i32_95 = arith.constant 16 : i32
    %186 = tpu.dynamic_rotate %174 by %c16_i32_95 dim 1 : vector<2x256xf32>, i32 -> vector<2x256xf32>
    %c1_i32_96 = arith.constant 1 : i32
    %187 = vector.broadcast %c1_i32_96 : i32 to vector<1x256xi32>
    %188 = arith.cmpi sge, %2, %187 : vector<1x256xi32>
    %cst_97 = arith.constant 0.000000e+00 : f32
    %189 = vector.shape_cast %188 : vector<1x256xi1> to vector<1x256xi1>
    %190 = vector.broadcast %189 : vector<1x256xi1> to vector<2x256xi1>
    %191 = vector.broadcast %cst_97 : f32 to vector<2x256xf32>
    %192 = arith.select %190, %186, %191 : vector<2x256xi1>, vector<2x256xf32>
    %c2_98 = arith.constant 2 : index
    %c0_99 = arith.constant 0 : index
    %193 = vector.load %arg7[%c2_98, %c0_99] : memref<40x256xf32, #tpu.memory_space<vmem>>, vector<2x256xf32>
    tpu.vector_store %arg7[%c2_98, %c0_99], %192 {strides = array<i32>} : memref<40x256xf32, #tpu.memory_space<vmem>>, vector<2x256xf32>,
    %c15_i32_100 = arith.constant 15 : i32
    %194 = tpu.dynamic_rotate %174 by %c15_i32_100 dim 1 : vector<2x256xf32>, i32 -> vector<2x256xf32>
    %c1_i32_101 = arith.constant 1 : i32
    %195 = vector.broadcast %c1_i32_101 : i32 to vector<1x256xi32>
    %196 = arith.cmpi sge, %2, %195 : vector<1x256xi32>
    %c14_i32_102 = arith.constant 14 : i32
    %197 = vector.broadcast %c14_i32_102 : i32 to vector<1x256xi32>
    %198 = arith.cmpi sle, %4, %197 : vector<1x256xi32>
    %199 = arith.andi %196, %198 : vector<1x256xi1>
    %cst_103 = arith.constant 0.000000e+00 : f32
    %200 = vector.shape_cast %199 : vector<1x256xi1> to vector<1x256xi1>
    %201 = vector.broadcast %200 : vector<1x256xi1> to vector<2x256xi1>
    %202 = vector.broadcast %cst_103 : f32 to vector<2x256xf32>
    %203 = arith.select %201, %194, %202 : vector<2x256xi1>, vector<2x256xf32>
    %c4_104 = arith.constant 4 : index
    %c0_105 = arith.constant 0 : index
    %204 = vector.load %arg7[%c4_104, %c0_105] : memref<40x256xf32, #tpu.memory_space<vmem>>, vector<2x256xf32>
    tpu.vector_store %arg7[%c4_104, %c0_105], %203 {strides = array<i32>} : memref<40x256xf32, #tpu.memory_space<vmem>>, vector<2x256xf32>,
    %c1_i32_106 = arith.constant 1 : i32
    %205 = tpu.dynamic_rotate %174 by %c1_i32_106 dim 1 : vector<2x256xf32>, i32 -> vector<2x256xf32>
    %c1_i32_107 = arith.constant 1 : i32
    %206 = vector.broadcast %c1_i32_107 : i32 to vector<1x256xi32>
    %207 = arith.cmpi sge, %4, %206 : vector<1x256xi32>
    %cst_108 = arith.constant 0.000000e+00 : f32
    %208 = vector.shape_cast %207 : vector<1x256xi1> to vector<1x256xi1>
    %209 = vector.broadcast %208 : vector<1x256xi1> to vector<2x256xi1>
    %210 = vector.broadcast %cst_108 : f32 to vector<2x256xf32>
    %211 = arith.select %209, %205, %210 : vector<2x256xi1>, vector<2x256xf32>
    %c6_109 = arith.constant 6 : index
    %c0_110 = arith.constant 0 : index
    %212 = vector.load %arg7[%c6_109, %c0_110] : memref<40x256xf32, #tpu.memory_space<vmem>>, vector<2x256xf32>
    tpu.vector_store %arg7[%c6_109, %c0_110], %211 {strides = array<i32>} : memref<40x256xf32, #tpu.memory_space<vmem>>, vector<2x256xf32>,
    %c8_111 = arith.constant 8 : index
    %c0_112 = arith.constant 0 : index
    %213 = vector.load %arg7[%c8_111, %c0_112] : memref<40x256xf32, #tpu.memory_space<vmem>>, vector<2x256xf32>
    tpu.vector_store %arg7[%c8_111, %c0_112], %174 {strides = array<i32>} : memref<40x256xf32, #tpu.memory_space<vmem>>, vector<2x256xf32>,
    %c255_i32_113 = arith.constant 255 : i32
    %214 = tpu.dynamic_rotate %174 by %c255_i32_113 dim 1 : vector<2x256xf32>, i32 -> vector<2x256xf32>
    %c14_i32_114 = arith.constant 14 : i32
    %215 = vector.broadcast %c14_i32_114 : i32 to vector<1x256xi32>
    %216 = arith.cmpi sle, %4, %215 : vector<1x256xi32>
    %cst_115 = arith.constant 0.000000e+00 : f32
    %217 = vector.shape_cast %216 : vector<1x256xi1> to vector<1x256xi1>
    %218 = vector.broadcast %217 : vector<1x256xi1> to vector<2x256xi1>
    %219 = vector.broadcast %cst_115 : f32 to vector<2x256xf32>
    %220 = arith.select %218, %214, %219 : vector<2x256xi1>, vector<2x256xf32>
    %c10_116 = arith.constant 10 : index
    %c0_117 = arith.constant 0 : index
    %221 = vector.load %arg7[%c10_116, %c0_117] : memref<40x256xf32, #tpu.memory_space<vmem>>, vector<2x256xf32>
    tpu.vector_store %arg7[%c10_116, %c0_117], %220 {strides = array<i32>} : memref<40x256xf32, #tpu.memory_space<vmem>>, vector<2x256xf32>,
    %c241_i32_118 = arith.constant 241 : i32
    %222 = tpu.dynamic_rotate %174 by %c241_i32_118 dim 1 : vector<2x256xf32>, i32 -> vector<2x256xf32>
    %c14_i32_119 = arith.constant 14 : i32
    %223 = vector.broadcast %c14_i32_119 : i32 to vector<1x256xi32>
    %224 = arith.cmpi sle, %2, %223 : vector<1x256xi32>
    %c1_i32_120 = arith.constant 1 : i32
    %225 = vector.broadcast %c1_i32_120 : i32 to vector<1x256xi32>
    %226 = arith.cmpi sge, %4, %225 : vector<1x256xi32>
    %227 = arith.andi %224, %226 : vector<1x256xi1>
    %cst_121 = arith.constant 0.000000e+00 : f32
    %228 = vector.shape_cast %227 : vector<1x256xi1> to vector<1x256xi1>
    %229 = vector.broadcast %228 : vector<1x256xi1> to vector<2x256xi1>
    %230 = vector.broadcast %cst_121 : f32 to vector<2x256xf32>
    %231 = arith.select %229, %222, %230 : vector<2x256xi1>, vector<2x256xf32>
    %c12_122 = arith.constant 12 : index
    %c0_123 = arith.constant 0 : index
    %232 = vector.load %arg7[%c12_122, %c0_123] : memref<40x256xf32, #tpu.memory_space<vmem>>, vector<2x256xf32>
    tpu.vector_store %arg7[%c12_122, %c0_123], %231 {strides = array<i32>} : memref<40x256xf32, #tpu.memory_space<vmem>>, vector<2x256xf32>,
    %c240_i32_124 = arith.constant 240 : i32
    %233 = tpu.dynamic_rotate %174 by %c240_i32_124 dim 1 : vector<2x256xf32>, i32 -> vector<2x256xf32>
    %c14_i32_125 = arith.constant 14 : i32
    %234 = vector.broadcast %c14_i32_125 : i32 to vector<1x256xi32>
    %235 = arith.cmpi sle, %2, %234 : vector<1x256xi32>
    %cst_126 = arith.constant 0.000000e+00 : f32
    %236 = vector.shape_cast %235 : vector<1x256xi1> to vector<1x256xi1>
    %237 = vector.broadcast %236 : vector<1x256xi1> to vector<2x256xi1>
    %238 = vector.broadcast %cst_126 : f32 to vector<2x256xf32>
    %239 = arith.select %237, %233, %238 : vector<2x256xi1>, vector<2x256xf32>
    %c14_127 = arith.constant 14 : index
    %c0_128 = arith.constant 0 : index
    %240 = vector.load %arg7[%c14_127, %c0_128] : memref<40x256xf32, #tpu.memory_space<vmem>>, vector<2x256xf32>
    tpu.vector_store %arg7[%c14_127, %c0_128], %239 {strides = array<i32>} : memref<40x256xf32, #tpu.memory_space<vmem>>, vector<2x256xf32>,
    %c239_i32_129 = arith.constant 239 : i32
    %241 = tpu.dynamic_rotate %174 by %c239_i32_129 dim 1 : vector<2x256xf32>, i32 -> vector<2x256xf32>
    %c14_i32_130 = arith.constant 14 : i32
    %242 = vector.broadcast %c14_i32_130 : i32 to vector<1x256xi32>
    %243 = arith.cmpi sle, %2, %242 : vector<1x256xi32>
    %c14_i32_131 = arith.constant 14 : i32
    %244 = vector.broadcast %c14_i32_131 : i32 to vector<1x256xi32>
    %245 = arith.cmpi sle, %4, %244 : vector<1x256xi32>
    %246 = arith.andi %243, %245 : vector<1x256xi1>
    %cst_132 = arith.constant 0.000000e+00 : f32
    %247 = vector.shape_cast %246 : vector<1x256xi1> to vector<1x256xi1>
    %248 = vector.broadcast %247 : vector<1x256xi1> to vector<2x256xi1>
    %249 = vector.broadcast %cst_132 : f32 to vector<2x256xf32>
    %250 = arith.select %248, %241, %249 : vector<2x256xi1>, vector<2x256xf32>
    %c16_133 = arith.constant 16 : index
    %c0_134 = arith.constant 0 : index
    %251 = vector.load %arg7[%c16_133, %c0_134] : memref<40x256xf32, #tpu.memory_space<vmem>>, vector<2x256xf32>
    tpu.vector_store %arg7[%c16_133, %c0_134], %250 {strides = array<i32>} : memref<40x256xf32, #tpu.memory_space<vmem>>, vector<2x256xf32>,
    %cst_135 = arith.constant 1.000000e+00 : f32
    %252 = vector.broadcast %cst_135 : f32 to vector<1x256xf32>
    %c18_136 = arith.constant 18 : index
    %c0_137 = arith.constant 0 : index
    %253 = vector.load %arg7[%c18_136, %c0_137] : memref<40x256xf32, #tpu.memory_space<vmem>>, vector<1x256xf32>
    tpu.vector_store %arg7[%c18_136, %c0_137], %252 {strides = array<i32>} : memref<40x256xf32, #tpu.memory_space<vmem>>, vector<1x256xf32>,
    %c0_138 = arith.constant 0 : index
    %c0_139 = arith.constant 0 : index
    %254 = vector.load %arg5[%c0_138, %c0_139] : memref<4x19xf32, #tpu.memory_space<vmem>>, vector<4x19xf32>
    %c0_140 = arith.constant 0 : index
    %c0_141 = arith.constant 0 : index
    %255 = vector.load %arg7[%c0_140, %c0_141] : memref<40x256xf32, #tpu.memory_space<vmem>>, vector<19x256xf32>
    %cst_142 = arith.constant dense<0.000000e+00> : vector<4x256xf32>
    %256 = tpu.matmul %254, %255, %cst_142 {dimension_numbers = #tpu.dot_dimension_numbers<[1], [0], [0], [1], [0, 0, 1, 1], [], []>} : vector<4x19xf32>, vector<19x256xf32>, vector<4x256xf32> -> vector<4x256xf32>
    %cst_143 = arith.constant 0.000000e+00 : f32
    %257 = vector.broadcast %cst_143 : f32 to vector<4x256xf32>
    %258 = arith.maximumf %256, %257 : vector<4x256xf32>
    %c0_144 = arith.constant 0 : index
    %c0_145 = arith.constant 0 : index
    %c0_146 = arith.constant 0 : index
    %259 = vector.load %arg1[%c0_144, %c0_145, %c0_146] : memref<1x4x256xf32, #tpu.memory_space<vmem>>, vector<1x4x256xf32>
    %260 = vector.shape_cast %259 : vector<1x4x256xf32> to vector<4x256xf32>
    %261 = arith.addf %258, %260 : vector<4x256xf32>
    %c0_147 = arith.constant 0 : index
    %c0_148 = arith.constant 0 : index
    %c0_149 = arith.constant 0 : index
    %262 = vector.load %arg6[%c0_147, %c0_148, %c0_149] : memref<1x4x256xf32, #tpu.memory_space<vmem>>, vector<1x4x256xf32>
    %263 = vector.shape_cast %262 : vector<1x4x256xf32> to vector<4x256xf32>
    %264 = vector.shape_cast %261 : vector<4x256xf32> to vector<1x4x256xf32>
    tpu.vector_store %arg6[%c0_147, %c0_148, %c0_149], %264 {strides = array<i32>} : memref<1x4x256xf32, #tpu.memory_space<vmem>>, vector<1x4x256xf32>,
    return
  }
  func.func @transform_0(%arg0: i32) -> (i32, i32, i32) {
    %c0_i32 = arith.constant 0 : i32
    %c0_i32_0 = arith.constant 0 : i32
    %c0_i32_1 = arith.constant 0 : i32
    return %arg0, %c0_i32, %c0_i32_0 : i32, i32, i32
  }
  func.func @transform_1(%arg0: i32) -> (i32, i32, i32) {
    %c0_i32 = arith.constant 0 : i32
    %c0_i32_0 = arith.constant 0 : i32
    %c0_i32_1 = arith.constant 0 : i32
    return %arg0, %c0_i32, %c0_i32_0 : i32, i32, i32
  }
  func.func @transform_2(%arg0: i32) -> (i32, i32) {
    %c0_i32 = arith.constant 0 : i32
    %c0_i32_0 = arith.constant 0 : i32
    %c0_i32_1 = arith.constant 0 : i32
    return %c0_i32, %c0_i32_0 : i32, i32
  }
  func.func @transform_3(%arg0: i32) -> (i32, i32) {
    %c0_i32 = arith.constant 0 : i32
    %c0_i32_0 = arith.constant 0 : i32
    %c0_i32_1 = arith.constant 0 : i32
    return %c0_i32, %c0_i32_0 : i32, i32
  }
  func.func @transform_4(%arg0: i32) -> (i32, i32) {
    %c0_i32 = arith.constant 0 : i32
    %c0_i32_0 = arith.constant 0 : i32
    %c0_i32_1 = arith.constant 0 : i32
    return %c0_i32, %c0_i32_0 : i32, i32
  }
  func.func @transform_5(%arg0: i32) -> (i32, i32, i32) {
    %c0_i32 = arith.constant 0 : i32
    %c0_i32_0 = arith.constant 0 : i32
    %c0_i32_1 = arith.constant 0 : i32
    return %arg0, %c0_i32, %c0_i32_0 : i32, i32, i32
  }
}

</mosaic_0001>

<bundles_post_ra>
// kernel: tpu_custom_call.1
= control target key start
LH: loop header
LB: loop body
LE: loop exit
PB: predicated region body
PF: predicated region fallthrough
CT: control target
= control target key end

     0   :  { %10 = vsyncpa [#allocation4], 0  ;;  %s1978_s0 = inlined_call_operand.hbm [shape: f32[2,4,256], index: 0, kind: input, shape index: {}]   ;;  %s1979_s1 = inlined_call_operand.hbm [shape: f32[2,4,256], index: 1, kind: input, shape index: {}]   ;;  %s1980_s2 = inlined_call_operand.vmem [shape: f32[2,37], index: 2, kind: input, shape index: {}]   ;;  %s1981_s3 = inlined_call_operand.vmem [shape: f32[2,19], index: 3, kind: input, shape index: {}]   ;;  %s1982_s4 = inlined_call_operand.vmem [shape: f32[4,19], index: 4, kind: input, shape index: {}]   ;;  %s1983_s5 = inlined_call_operand.hbm [shape: f32[2,4,256], index: 5, kind: output, shape index: {}]  }
   0x1   :  { %12 = vsyncpa [#allocation4 + $0x1], 0 }
   0x2   :  { %13 = vsyncpa [#allocation7], 0 }
   0x3   :  { %15 = vsyncpa [#allocation7 + $0x1], 0 }
   0x4   :  { %16 = vsyncpa [#allocation5], 0 }
   0x5   :  { %18 = vsyncpa [#allocation5 + $0x1], 0  ;;  %s1378_s18 = smov 0   ;;  %s1380_s19 = smov 0  }
   0x6   :  { %s1382_s20 = smov 0   ;;  %s1384_s21 = smov 0  }
   0x7 LB: > { %s1399_s22 = sadd.s32 4294967295, %s1333_s21   ;;  %s1094_s23 = sadd.s32 4294967294, %s1333_s21   ;;  %s1333_s21 = sphi %s1384_s21, %s2096_s21   ;;  %s1329_s20 = sphi %s1382_s20, %s2095_s20   ;;  %s1325_s19 = sphi %s1380_s19, %s2094_s19   ;;  %s1321_s18 = sphi %s1378_s18, %s2093_s18  }
   0x8   : > { %s1403_s24 = sadd.s32 1, %s1333_s21   ;;  %s31_s25 = sadd.s32 1, %s1329_s20 }
   0x9   : > { %s28_s26 = ssub.s32 %s1333_s21, %s1403_s24  ;;  %p38_p0 = scmp.ne.s32.totalorder %s1329_s20, %s1325_s19 }
   0xa   : > { %p29_p1 = scmp.eq.s32.totalorder %s28_s26, 0  ;;  %p39_p2 = scmp.eq.s32.totalorder %s1333_s21, 0 }
   0xb   : > { %p44_p3 = scmp.ne.s32.totalorder %s1325_s19, %s1321_s18  ;;  %p45_p4 = scmp.eq.s32.totalorder %s1399_s22, 0 }
   0xc   : > { %s1415_s27 = scalar_select %p29_p1, %s1329_s20, %s31_s25  }
   0xd   : > { %p1417_p5 = por %p39_p2, %p38_p0  ;;  %p1421_p6 = por %p45_p4, %p44_p3 }
   0xe   : > { %p157_p7 = scmp.eq.s32.totalorder %s1399_s22, 1  ;;  %p163_p8 = scmp.eq.s32.totalorder %s1094_s23, 1 }
   0xf   : > { %s2006_s29 = scalar_select %p1421_p6, 1, 0 }
  0x10   : > { %p1157_p10 = scmp.lt.s32.totalorder %s1333_s21, 2  ;;  %p1428_p11 = por %p157_p7, %p38_p0 }
  0x11   : > { %p1432_p12 = por %p163_p8, %p44_p3  ;;  %s1437_s7 = sand.u32 1, %s1329_s20  }
  0x12   : > { %s2007_s30 = scalar_select %p1428_p11, 1, 0 }
  0x13   : > { %s2008_s6 = scalar_select %p1432_p12, 1, 0 }
  0x14   : > { %s1121_s8 = sshll.u32 %s1333_s21, 7  ;;  %s1097_s9 = sshll.u32 %s1437_s7, 3 }
  0x15   : > { %s1446_s12 = scalar_lea.hbm %s1978_s0, %s1121_s8  ;;  %s196_s13 = scalar_lea.vmem [#allocation3], %s1097_s9 }
  0x16   : > { %s204_s14 = sshll.u32 %s196_s13, 4  ;;  %p1452_p13 = pnand %p1157_p10, %p1417_p5  ;;  %s1456_s14 = int_to_ptr.vmem [resolvable:$true] %s204_s14 }
  0x17   : > { %s193_s16 = scalar_lea.sflag [#allocation4], %s1437_s7  ;;  %s1203_s17 = scalar_lea.hbm %s1446_s12, 128 }
  0x18   : > { %p1204_p2 = scmp.ne.s32.totalorder %s1446_s12, %s1203_s17  ;;  %p1205_p3 = pneg %p1452_p13 }
  0x19   : > { %s1208_s26 = scalar_lea.hbm %s1978_s0, 256  ;;  %p1209_p5 = scmp.lt.u32.totalorder %s1446_s12, %s1978_s0 }
  0x1a   : > { %p1206_p4 = pnand %p1205_p3, %p1204_p2  ;;  %p1210_p8 = scmp.lt.u32.totalorder %s1208_s26, %s1203_s17 }
  0x1b   : > { %p1212_p9 = scmp.lt.u32.totalorder %s1203_s17, %s1446_s12 }
  0x1c   : > { %p1207_p7 = pneg %p1206_p4  ;;  %p1211_p10 = por %p1210_p8, %p1209_p5 }
  0x1e   : > { %p1213_p0 = por %p1212_p9, %p1211_p10 }
  0x20   : > { %p1214_p1 = pnand %p1213_p0, %p1207_p7 }
  0x22   : > { %1217 = shalt.err (!%p1214_p1)
}
  0x23   : > { %s1218_s11 = scalar_lea.vmem %s1456_s14, 128  ;;  %s1335_s13 = smov [#allocation3]  }
  0x24   : > { %p1219_p2 = scmp.ne.s32.totalorder %s1456_s14, %s1218_s11  ;;  %s1223_s23 = sshll.u32 %s1335_s13, 4  ;;  %s1224_s23 = int_to_ptr.vmem [resolvable:$false] %s1223_s23 }
  0x25   : > { %s1225_s25 = scalar_lea.vmem %s1224_s23, 256  ;;  %p1226_p11 = scmp.lt.s32.totalorder %s1456_s14, %s1224_s23 }
  0x26   : > { %p1221_p4 = pnand %p1219_p2, %p1205_p3  ;;  %p1227_p5 = scmp.lt.s32.totalorder %s1225_s25, %s1218_s11 }
  0x28   : > { %p1222_p12 = pneg %p1221_p4  ;;  %p1228_p8 = por %p1227_p5, %p1226_p11 }
  0x2a   : > { %p1229_p9 = pnand %p1228_p8, %p1222_p12 }
  0x2c   : > { %1232 = shalt.err (!%p1229_p9)
}
  0x2d   : > { %1149 = dma.hbm_to_vmem [thread:$0]  (!%p1452_p13), %s1446_s12, 128, %s1456_s14, %s193_s16  }
  0x2e   : > { %p2010_p0 = scmp.lt.s32.totalorder %s1333_s21, 3  ;;  %p2011_p1 = scmp.ge.s32.totalorder %s1333_s21, 1 }
  0x2f   : > { %s1499_s10 = scalar_lea.hbm %s1979_s1, %s1121_s8  ;;  %s215_s11 = scalar_lea.vmem [#allocation6], %s1097_s9 }
  0x30   : > { %p1490_p7 = pnand %p2011_p1, %p2010_p0  ;;  %s223_s13 = sshll.u32 %s215_s11, 4  ;;  %s224_s13 = int_to_ptr.vmem [resolvable:$true] %s223_s13 }
  0x31   : > { %s212_s12 = scalar_lea.sflag [#allocation7], %s1437_s7  ;;  %s1233_s14 = scalar_lea.hbm %s1499_s10, 128 }
  0x32   : > { %s2012_s17 = scalar_select %p1490_p7, 1, 0 }
  0x33   : > { %p1234_p11 = scmp.ne.s32.totalorder %s1499_s10, %s1233_s14  ;;  %s1238_s8 = scalar_lea.hbm %s1979_s1, 256 }
  0x34   : > { %p1239_p2 = scmp.lt.u32.totalorder %s1499_s10, %s1979_s1  ;;  %p1240_p4 = scmp.lt.u32.totalorder %s1238_s8, %s1233_s14 }
  0x35   : > { %p1236_p12 = pnand %p1234_p11, %p1205_p3  ;;  %p1242_p8 = scmp.lt.u32.totalorder %s1233_s14, %s1499_s10 }
  0x36   : > { %p1241_p5 = por %p1240_p4, %p1239_p2 }
  0x37   : > { %p1237_p10 = pneg %p1236_p12 }
  0x38   : > { %p1243_p9 = por %p1242_p8, %p1241_p5 }
  0x3a   : > { %p1244_p0 = pnand %p1243_p9, %p1237_p10 }
  0x3c   : > { %1247 = shalt.err (!%p1244_p0)
}
  0x3d   : > { %s1248_s7 = scalar_lea.vmem %s224_s13, 128  ;;  %s1336_s9 = smov [#allocation6]  }
  0x3e   : > { %p1249_p1 = scmp.ne.s32.totalorder %s224_s13, %s1248_s7  ;;  %s1253_s28 = sshll.u32 %s1336_s9, 4  ;;  %s1254_s28 = int_to_ptr.vmem [resolvable:$false] %s1253_s28 }
  0x3f   : > { %s1255_s11 = scalar_lea.vmem %s1254_s28, 256  ;;  %p1256_p6 = scmp.lt.s32.totalorder %s224_s13, %s1254_s28 }
  0x40   : > { %p1251_p11 = pnand %p1249_p1, %p1205_p3  ;;  %p1257_p7 = scmp.lt.s32.totalorder %s1255_s11, %s1248_s7 }
  0x42   : > { %p1252_p12 = pneg %p1251_p11  ;;  %p1258_p2 = por %p1257_p7, %p1256_p6 }
  0x44   : > { %p1259_p4 = pnand %p1258_p2, %p1252_p12 }
  0x46   : > { %1262 = shalt.err (!%p1259_p4)
}
  0x47   : > { %1152 = dma.hbm_to_vmem [thread:$0]  (!%p1452_p13), %s1499_s10, 128, %s224_s13, %s212_s12  }
  0x48   : > { %p2013_p10 = scmp.ne.s32.totalorder %s2012_s17, 0 }
  0x49   : > { %s1526_s14 = sand.u32 (!%p2013_p10), 1, %s1325_s19   ;;  %p2014_p6 = scmp.ne.s32.totalorder (!%p2013_p10), %s2006_s29, 0 }
  0x4a   : > { %232 = sbr.rel (%p2013_p10) target bundleno = 1219 (0x4c3), region = 40  ;;  %s1529_s16 = sshll.u32 (!%p2013_p10), %s1526_s14, 3 }
  0x4b   : > { %s235_s23 = scalar_lea.sflag (!%p2013_p10), [#allocation4], %s1526_s14  ;;  %s238_s8 = scalar_lea.vmem (!%p2013_p10), [#allocation3], %s1529_s16 }
  0x51   : > { %1308 = dma.done.wait (%p2014_p6), %s235_s23, 128  }
  0x52   : > { %1310 = vsyncadd (%p2014_p6), %s235_s23, 4294967168  ;;  %s244_s15 = scalar_lea.sflag [#allocation7], %s1526_s14  ;;  %s247_s17 = scalar_lea.vmem [#allocation6], %s1529_s16 }
  0x53   : > { %1312 = dma.done.wait (%p2014_p6), %s244_s15, 128  }
  0x54   : > { %1314 = vsyncadd (%p2014_p6), %s244_s15, 4294967168  ;;  %v286_v0 = vld [vmem:[%s247_s17] sm:$0xff]  ;;  %s1337_s10 = smov 1   ;;  %s1338_s13 = smov 16   ;;  %v279_v2 = vlaneseq  ;;  %v2015_v3 = vmov 0  ;;  %v1342_v4 = vmov 1.0  }
  0x55   : > { %351 = vrot.lane.b32.xlu1 %v286_v0, %s1337_s10  ;;  %372 = vst [vmem:[#allocation2 + $0x20] sm:$0xf] %v286_v0  ;;  %311 = vrot.lane.b32.xlu0 %v286_v0, %s1338_s13  ;;  %v288_v1 = vcombine.high %v286_v0, %v286_v0  ;;  %s1339_s12 = smov 17   ;;  %s1340_s29 = smov 15   ;;  %v1346_v5 = vmov 0.0   ;;  %v2025_v24 = vmov 0 }
  0x56   : > { %s1341_s25 = smov 127   ;;  %vm1553_vm0 = vcmp.lt.s32.totalorder %v279_v2, 256  ;;  %s1343_s26 = smov 112   ;;  %545 = vmatprep.mubr.f32.mxu0 %v1346_v5  ;;  %757 = vmatprep.mubr.f32.mxu1 %v1346_v5  ;;  %v1568_v6 = vand.u32 127, %v279_v2  ;;  %v2027_v27 = vmov 0  ;;  %v2037_v58 = vmov 0 }
  0x57   : > { %373 = vst [vmem:[#allocation2 + $0x28] sm:$0xf] %v288_v1  ;;  %v2016_v3 = vsel %vm1553_vm0, 4294967295, %v2015_v3  ;;  %457 = vst.msk [vmem:[#allocation2 + $0x44] ss:$8 sm:$0x3] %vm1553_vm0, %v1342_v4 }
  0x58   : > { %s1344_s7 = smov 113   ;;  %s1345_s9 = smov 111   ;;  %v1571_v7 = vadd.s32 128, %v1568_v6  ;;  %v284_v8 = vand.u32 15, %v1568_v6  ;;  %v282_v10 = vshra.s32 %v1568_v6, 4  ;;  %vm1987_vm1 = vcmp.lt.s32.totalorder %v1568_v6, 1 }
  0x59   : > { %290 = vrot.lane.b32.xlu0 %v286_v0, %s1339_s12  ;;  %353 = vrot.lane.b32.xlu1 %v288_v1, %s1337_s10  ;;  %vm1986_vm6 = vcmp.lt.s32.totalorder %v1568_v6, 17  ;;  %vm1990_vm8 = vcmp.lt.s32.totalorder %v1568_v6, 16  ;;  %vm1988_vm11 = vcmp.lt.s32.totalorder %v1568_v6, 15  ;;  %vm1989_vm15 = vcmp.lt.s32.totalorder %v1568_v6, 127  ;;  %p2090_p3 = scmp.ne.s32.totalorder %s2007_s30, 0 }
  0x5a   : > { %v285_v9 = vand.u32 15, %v1571_v7  ;;  %v283_v13 = vshra.s32 %v1571_v7, 4  ;;  %vm1578_vm2 = vcmp.ge.s32.totalorder %v284_v8, 1  ;;  %vm1586_vm4 = vcmp.ge.s32.totalorder %v282_v10, 1 }
  0x5b   : > { %vm1607_vm7 = vmand %vm1586_vm4, %vm1578_vm2  ;;  %vm1620_vm10 = vcmp.le.s32.totalorder %v284_v8, 14  ;;  %v2039_v59 = vmov 0 }
  0x5c   : > { %vm1582_vm3 = vcmp.ge.s32.totalorder %v285_v9, 1  ;;  %vm1590_vm5 = vcmp.ge.s32.totalorder %v283_v13, 1  ;;  %v2026_v24 = vsel %vm1607_vm7, 4294967295, %v2025_v24  ;;  %vm1625_vm12 = vcmp.le.s32.totalorder %v285_v9, 14  ;;  %vm1649_vm13 = vmand %vm1586_vm4, %vm1620_vm10 }
  0x5d   : > { %292 = vrot.lane.b32.xlu1 %v288_v1, %s1339_s12  ;;  %313 = vrot.lane.b32.xlu0 %v288_v1, %s1338_s13  ;;  %vm1616_vm9 = vmand %vm1590_vm5, %vm1582_vm3 }
  0x5e   : > { %v2028_v27 = vsel %vm1616_vm9, 4294967295, %v2027_v27  ;;  %vm1657_vm14 = vmand %vm1590_vm5, %vm1625_vm12 }
  0x61   : > { %334 = vrot.lane.b32.xlu1 %v288_v1, %s1340_s29  ;;  %332 = vrot.lane.b32.xlu0 %v286_v0, %s1340_s29 }
  0x65   : > { %376 = vrot.lane.b32.xlu1 %v288_v1, %s1341_s25  ;;  %374 = vrot.lane.b32.xlu0 %v286_v0, %s1341_s25 }
  0x69   : > { %416 = vrot.lane.b32.xlu1 %v288_v1, %s1343_s26  ;;  %414 = vrot.lane.b32.xlu0 %v286_v0, %s1343_s26 }
  0x6d   : > { %397 = vrot.lane.b32.xlu1 %v288_v1, %s1344_s7  ;;  %395 = vrot.lane.b32.xlu0 %v286_v0, %s1344_s7 }
  0x71   : > { %437 = vrot.lane.b32.xlu1 %v288_v1, %s1345_s9  ;;  %435 = vrot.lane.b32.xlu0 %v286_v0, %s1345_s9  ;;  %v2041_v0 = vmov 0 }
  0xc7   : > { %v352_v11 = vpop.permute.xlu1 %351  ;;  %v312_v12 = vpop.permute.xlu0 %311 }
  0xcb   : > { %v291_v17 = vpop.permute.xlu0 %290  ;;  %v354_v18 = vpop.permute.xlu1 %353 }
  0xcc   : > { %v356_v20 = vsel %vm1987_vm1, %v352_v11, %v354_v18  ;;  %v357_v21 = vsel %vm1987_vm1, %v354_v18, %v352_v11  ;;  %vm1679_vm1 = vcmp.le.s32.totalorder %v282_v10, 14 }
  0xcd   : > { %v362_v22 = vsel %vm1578_vm2, %v357_v21, 0.0  ;;  %v363_v23 = vsel %vm1582_vm3, %v356_v20, 0.0  ;;  %v2038_v58 = vsel %vm1679_vm1, 4294967295, %v2037_v58 }
  0xce   : > { %v366_v25 = vrot.slane %v362_v22, 4  ;;  %v367_v26 = vrot.slane %v363_v23, 4 }
  0xcf   : > { %v293_v29 = vpop.permute.xlu1 %292  ;;  %v314_v30 = vpop.permute.xlu0 %313 }
  0xd0   : > { %370 = vst [vmem:[#allocation2 + $0x10] sm:$0xf0] %v366_v25  ;;  %371 = vst [vmem:[#allocation2 + $0x18] sm:$0xf0] %v367_v26  ;;  %v295_v32 = vsel %vm1986_vm6, %v291_v17, %v293_v29  ;;  %v296_v33 = vsel %vm1986_vm6, %v293_v29, %v291_v17  ;;  %v316_v34 = vsel %vm1990_vm8, %v312_v12, %v314_v30  ;;  %vm1991_vm6 = vcmp.lt.s32.totalorder %v1568_v6, 112 }
  0xd1   : > { %v317_v35 = vsel %vm1990_vm8, %v314_v30, %v312_v12  ;;  %v307_v36 = vsel %vm1607_vm7, %v296_v33, 0.0  ;;  %v308_v37 = vsel %vm1616_vm9, %v295_v32, 0.0  ;;  %v323_v39 = vsel %vm1590_vm5, %v316_v34, 0.0  ;;  %vm1725_vm7 = vmand %vm1679_vm1, %vm1620_vm10  ;;  %v886_v29 = vld [vmem:[%s1982_s4] sm:$0xf] }
  0xd2   : > { %v322_v38 = vsel %vm1586_vm4, %v317_v35, 0.0  ;;  %309 = vst [vmem:[#allocation2] sm:$0xf] %v307_v36  ;;  %310 = vst [vmem:[#allocation2 + $0x8] sm:$0xf] %v308_v37  ;;  %v327_v42 = vrot.slane %v323_v39, 4 }
  0xd3   : > { %v326_v41 = vrot.slane %v322_v38, 4  ;;  %v335_v44 = vpop.permute.xlu1 %334  ;;  %v333_v45 = vpop.permute.xlu0 %332  ;;  %vm1996_vm8 = vcmp.lt.s32.totalorder %v1568_v6, 113  ;;  %vm1999_vm9 = vcmp.lt.s32.totalorder %v1568_v6, 111 }
  0xd4   : > { %331 = vst [vmem:[#allocation2 + $0x8] sm:$0xf0] %v327_v42  ;;  %v337_v46 = vsel %vm1988_vm11, %v333_v45, %v335_v44  ;;  %v338_v47 = vsel %vm1988_vm11, %v335_v44, %v333_v45  ;;  %vm1683_vm11 = vcmp.le.s32.totalorder %v283_v13, 14  ;;  %v2043_v13 = vmov 0 }
  0xd5   : > { %330 = vst [vmem:[#allocation2] sm:$0xf0] %v326_v41  ;;  %v347_v48 = vsel %vm1649_vm13, %v338_v47, 0.0  ;;  %v348_v49 = vsel %vm1657_vm14, %v337_v46, 0.0  ;;  %v2040_v59 = vsel %vm1683_vm11, 4294967295, %v2039_v59 }
  0xd6   : > { %349 = vst [vmem:[#allocation2 + $0x10] sm:$0xf] %v347_v48  ;;  %350 = vst [vmem:[#allocation2 + $0x18] sm:$0xf] %v348_v49  ;;  %v459_v48 = vld [vmem:[%s1980_s2] sm:$0x3] }
  0xd7   : > { %v377_v50 = vpop.permute.xlu1 %376  ;;  %v375_v51 = vpop.permute.xlu0 %374 }
  0xd8   : > { %v379_v52 = vsel %vm1989_vm15, %v375_v51, %v377_v50  ;;  %v380_v53 = vsel %vm1989_vm15, %v377_v50, %v375_v51  ;;  %vm1695_vm15 = vmand %vm1679_vm1, %vm1578_vm2 }
  0xd9   : > { %v385_v54 = vsel %vm1620_vm10, %v379_v52, 0.0  ;;  %v386_v55 = vsel %vm1625_vm12, %v380_v53, 0.0  ;;  %v2042_v0 = vsel %vm1695_vm15, 4294967295, %v2041_v0 }
  0xda   : > { %v389_v56 = vrot.slane %v385_v54, 4  ;;  %v390_v57 = vrot.slane %v386_v55, 4 }
  0xdb   : > { %v417_v60 = vpop.permute.xlu1 %416  ;;  %v415_v61 = vpop.permute.xlu0 %414  ;;  %v461_v1 = vld [vmem:[#allocation2 + $0x8] sm:$0xff] }
  0xdc   : > { %393 = vst [vmem:[#allocation2 + $0x20] sm:$0xf0] %v389_v56  ;;  %394 = vst [vmem:[#allocation2 + $0x28] sm:$0xf0] %v390_v57  ;;  %v419_v62 = vsel %vm1991_vm6, %v415_v61, %v417_v60  ;;  %v420_v63 = vsel %vm1991_vm6, %v417_v60, %v415_v61  ;;  %v460_v9 = vld [vmem:[#allocation2] sm:$0xff] }
  0xdd   : > { %v425_v2 = vsel %vm1679_vm1, %v419_v62, 0.0  ;;  %v426_v7 = vsel %vm1683_vm11, %v420_v63, 0.0  ;;  %v463_v8 = vld [vmem:[#allocation2 + $0x18] sm:$0xff]  ;;  %v462_v10 = vld [vmem:[#allocation2 + $0x10] sm:$0xff]  ;;  %vm1708_vm6 = vmand %vm1683_vm11, %vm1582_vm3 }
  0xde   : > { %v429_v11 = vrot.slane %v425_v2, 4  ;;  %v430_v12 = vrot.slane %v426_v7, 4  ;;  %v2044_v13 = vsel %vm1708_vm6, 4294967295, %v2043_v13  ;;  %v1124_v17 = vpack.c.bf16 %v463_v8, %v461_v1 }
  0xdf   : > { %v1126_v18 = vpack.c.bf16 %v462_v10, %v460_v9  ;;  %v398_v20 = vpop.permute.xlu1 %397  ;;  %v396_v21 = vpop.permute.xlu0 %395 }
  0xe0   : > { %433 = vst [vmem:[#allocation2 + $0x30] sm:$0xf0] %v429_v11  ;;  %434 = vst [vmem:[#allocation2 + $0x38] sm:$0xf0] %v430_v12  ;;  %v400_v22 = vsel %vm1996_vm8, %v396_v21, %v398_v20  ;;  %v401_v23 = vsel %vm1996_vm8, %v398_v20, %v396_v21  ;;  %1125 = vmatprep.subr.bf16.mxu0 %v1124_v17 }
  0xe1   : > { %v410_v25 = vsel %vm1695_vm15, %v400_v22, 0.0  ;;  %v411_v26 = vsel %vm1708_vm6, %v401_v23, 0.0  ;;  %1127 = vmatpush1.bf16.msra.mxu0 %v1126_v18  ;;  %vm1733_vm8 = vmand %vm1683_vm11, %vm1625_vm12  ;;  %vm474_vm11 = vcmask 1044480  }
  0xe2   : > { %412 = vst [vmem:[#allocation2 + $0x30] sm:$0xf] %v410_v25  ;;  %413 = vst [vmem:[#allocation2 + $0x38] sm:$0xf] %v411_v26 }
  0xe3   : > { %v438_v32 = vpop.permute.xlu1 %437  ;;  %v436_v33 = vpop.permute.xlu0 %435  ;;  %v465_v34 = vld [vmem:[#allocation2 + $0x28] sm:$0xff]  ;;  %v464_v35 = vld [vmem:[#allocation2 + $0x20] sm:$0xff] }
  0xe4   : > { %v440_v36 = vsel %vm1999_vm9, %v436_v33, %v438_v32  ;;  %v441_v37 = vsel %vm1999_vm9, %v438_v32, %v436_v33  ;;  %673 = vst.msk [vmem:[#allocation2 + $0x22] ss:$8 sm:$0x3] %vm1553_vm0, %v1342_v4  ;;  %vm470_vm9 = vcmask 302080   ;;  %vm2051_vm0 = vcmp.lt.s32.totalorder %v1568_v6, 15 }
  0xe5   : > { %v448_v38 = vsel %vm1725_vm7, %v440_v36, 0.0  ;;  %v449_v39 = vsel %vm1733_vm8, %v441_v37, 0.0 }
  0xe6   : > { %450 = vst [vmem:[#allocation2 + $0x40] sm:$0xf] %v448_v38  ;;  %451 = vst [vmem:[#allocation2 + $0x48] sm:$0xf] %v449_v39 }
  0xe9   : > { %v467_v41 = vld [vmem:[#allocation2 + $0x38] sm:$0xff]  ;;  %v466_v42 = vld [vmem:[#allocation2 + $0x30] sm:$0xff] }
  0xea   : > { %v1128_v44 = vpack.c.bf16 %v467_v41, %v465_v34  ;;  %v1130_v45 = vpack.c.bf16 %v466_v42, %v464_v35 }
  0xec   : > { %1129 = vmatprep.subr.bf16.mxu0 %v1128_v44 }
  0xed   : > { %1131 = vmatpush1.bf16.msra.mxu0 %v1130_v45  ;;  %v469_v46 = vld [vmem:[#allocation2 + $0x48] sm:$0x1f]  ;;  %v468_v47 = vld [vmem:[#allocation2 + $0x40] sm:$0x1f] }
  0xee   : > { %1107 = vmatprep.subr.msk.mxu0 %vm474_vm11, %v469_v46 }
  0xf1   : > { %1108 = vmatpush1.msk.msra.mxu0 %vm474_vm11, %v468_v47 }
  0xf2   : > { %1109 = vmatmul.mubr.msk.f32.vlgmr.msra.gmra.mrb[0].mxu0 %vm470_vm9, %v459_v48  ;;  %vm2049_vm9 = vcmp.lt.s32.totalorder %v1568_v6, 16 }
  0xf3   : > { %vm2050_vm11 = vmmov %vm2049_vm9 }
 0x1c5   : > { %v547_v49 = vpop.f32.mrb[0].mxu0 }
 0x1c6   : > { %v552_v50 = vmax.f32 %v547_v49, 0.0  ;;  %v549_v51 = vpop.f32.mrb[1].mxu0 }
 0x1c7   : > { %v553_v52 = vmax.f32 %v549_v51, 0.0 }
 0x1c8   : > { %612 = vst [vmem:[#allocation2 + $0x10] sm:$0x3] %v552_v50  ;;  %564 = vrot.lane.b32.xlu0 %v552_v50, %s1338_s13 }
 0x1c9   : > { %613 = vst [vmem:[#allocation2 + $0x18] sm:$0x3] %v553_v52  ;;  %566 = vrot.lane.b32.xlu1 %v553_v52, %s1338_s13 }
 0x1cc   : > { %580 = vrot.lane.b32.xlu0 %v552_v50, %s1340_s29 }
 0x1cd   : > { %582 = vrot.lane.b32.xlu1 %v553_v52, %s1340_s29 }
 0x1d0   : > { %596 = vrot.lane.b32.xlu0 %v552_v50, %s1337_s10 }
 0x1d1   : > { %598 = vrot.lane.b32.xlu1 %v553_v52, %s1337_s10 }
 0x1d4   : > { %614 = vrot.lane.b32.xlu0 %v552_v50, %s1341_s25 }
 0x1d5   : > { %616 = vrot.lane.b32.xlu1 %v553_v52, %s1341_s25 }
 0x1d8   : > { %630 = vrot.lane.b32.xlu0 %v552_v50, %s1344_s7 }
 0x1d9   : > { %632 = vrot.lane.b32.xlu1 %v553_v52, %s1344_s7 }
 0x1dc   : > { %646 = vrot.lane.b32.xlu0 %v552_v50, %s1343_s26 }
 0x1dd   : > { %648 = vrot.lane.b32.xlu1 %v553_v52, %s1343_s26 }
 0x1e0   : > { %554 = vrot.lane.b32.xlu0 %v552_v50, %s1339_s12 }
 0x1e1   : > { %556 = vrot.lane.b32.xlu1 %v553_v52, %s1339_s12 }
 0x1e4   : > { %662 = vrot.lane.b32.xlu0 %v552_v50, %s1345_s9 }
 0x1e5   : > { %664 = vrot.lane.b32.xlu1 %v553_v52, %s1345_s9 }
 0x23a   : > { %v565_v53 = vpop.permute.xlu0 %564 }
 0x23b   : > { %v567_v54 = vpop.permute.xlu1 %566 }
 0x23c   : > { %v568_v55 = vsel %vm2049_vm9, %v565_v53, %v567_v54  ;;  %v569_v56 = vsel %vm2050_vm11, %v567_v54, %v565_v53  ;;  %vm2052_vm9 = vmmov %vm2051_vm0  ;;  %vm2053_vm11 = vcmp.lt.s32.totalorder %v1568_v6, 1 }
 0x23d   : > { %v570_v57 = vsel %vm1586_vm4, %v569_v56, 0.0  ;;  %v571_v60 = vsel %vm1590_vm5, %v568_v55, 0.0 }
 0x23e   : > { %v574_v61 = vrot.slane %v570_v57, 6  ;;  %v575_v62 = vrot.slane %v571_v60, 6  ;;  %v581_v63 = vpop.permute.xlu0 %580 }
 0x23f   : > { %v583_v1 = vpop.permute.xlu1 %582 }
 0x240   : > { %578 = vst [vmem:[#allocation2] sm:$0xc] %v574_v61  ;;  %579 = vst [vmem:[#allocation2 + $0x8] sm:$0xc] %v575_v62  ;;  %v584_v2 = vsel %vm2051_vm0, %v581_v63, %v583_v1  ;;  %v585_v7 = vsel %vm2052_vm9, %v583_v1, %v581_v63  ;;  %vm2055_vm9 = vcmp.lt.s32.totalorder %v1568_v6, 127 }
 0x241   : > { %v586_v8 = vsel %vm1649_vm13, %v585_v7, 0.0  ;;  %v587_v9 = vsel %vm1657_vm14, %v584_v2, 0.0  ;;  %vm2054_vm0 = vmmov %vm2053_vm11 }
 0x242   : > { %v590_v10 = vrot.slane %v586_v8, 4  ;;  %v591_v11 = vrot.slane %v587_v9, 4  ;;  %v597_v12 = vpop.permute.xlu0 %596 }
 0x243   : > { %v599_v17 = vpop.permute.xlu1 %598 }
 0x244   : > { %594 = vst [vmem:[#allocation2] sm:$0x30] %v590_v10  ;;  %595 = vst [vmem:[#allocation2 + $0x8] sm:$0x30] %v591_v11  ;;  %v600_v18 = vsel %vm2053_vm11, %v597_v12, %v599_v17  ;;  %v601_v20 = vsel %vm2054_vm0, %v599_v17, %v597_v12  ;;  %vm2057_vm0 = vcmp.lt.s32.totalorder %v1568_v6, 113 }
 0x245   : > { %v602_v21 = vsel %vm1578_vm2, %v601_v20, 0.0  ;;  %v603_v22 = vsel %vm1582_vm3, %v600_v18, 0.0  ;;  %vm2056_vm11 = vmmov %vm2055_vm9 }
 0x246   : > { %v606_v23 = vrot.slane %v602_v21, 2  ;;  %v607_v25 = vrot.slane %v603_v22, 2  ;;  %v615_v26 = vpop.permute.xlu0 %614 }
 0x247   : > { %v617_v32 = vpop.permute.xlu1 %616 }
 0x248   : > { %610 = vst [vmem:[#allocation2] sm:$0xc0] %v606_v23  ;;  %611 = vst [vmem:[#allocation2 + $0x8] sm:$0xc0] %v607_v25  ;;  %v618_v33 = vsel %vm2055_vm9, %v615_v26, %v617_v32  ;;  %v619_v34 = vsel %vm2056_vm11, %v617_v32, %v615_v26  ;;  %vm2059_vm11 = vcmp.lt.s32.totalorder %v1568_v6, 112 }
 0x249   : > { %v620_v35 = vsel %vm1620_vm10, %v618_v33, 0.0  ;;  %v621_v36 = vsel %vm1625_vm12, %v619_v34, 0.0  ;;  %vm2058_vm9 = vmmov %vm2057_vm0  ;;  %v675_v26 = vld [vmem:[%s1981_s3] sm:$0x3] }
 0x24a   : > { %v624_v37 = vrot.slane %v620_v35, 6  ;;  %v625_v38 = vrot.slane %v621_v36, 6  ;;  %v631_v39 = vpop.permute.xlu0 %630 }
 0x24b   : > { %v633_v41 = vpop.permute.xlu1 %632 }
 0x24c   : > { %628 = vst [vmem:[#allocation2 + $0x10] sm:$0xc] %v624_v37  ;;  %629 = vst [vmem:[#allocation2 + $0x18] sm:$0xc] %v625_v38  ;;  %v634_v42 = vsel %vm2057_vm0, %v631_v39, %v633_v41  ;;  %v635_v44 = vsel %vm2058_vm9, %v633_v41, %v631_v39  ;;  %vm2061_vm9 = vnez %v2040_v59 }
 0x24d   : > { %v636_v45 = vsel %vm1695_vm15, %v634_v42, 0.0  ;;  %v637_v46 = vsel %vm1708_vm6, %v635_v44, 0.0  ;;  %vm2060_vm0 = vmmov %vm2059_vm11  ;;  %vm2062_vm6 = vcmp.lt.s32.totalorder %v1568_v6, 17 }
 0x24e   : > { %v640_v47 = vrot.slane %v636_v45, 4  ;;  %v641_v48 = vrot.slane %v637_v46, 4  ;;  %v647_v49 = vpop.permute.xlu0 %646 }
 0x24f   : > { %v649_v50 = vpop.permute.xlu1 %648 }
 0x250   : > { %644 = vst [vmem:[#allocation2 + $0x10] sm:$0x30] %v640_v47  ;;  %645 = vst [vmem:[#allocation2 + $0x18] sm:$0x30] %v641_v48  ;;  %v650_v51 = vsel %vm2059_vm11, %v647_v49, %v649_v50  ;;  %v651_v52 = vsel %vm2060_vm0, %v649_v50, %v647_v49  ;;  %vm2064_vm0 = vnez %v2026_v24 }
 0x251   : > { %v652_v53 = vsel %vm1679_vm1, %v650_v51, 0.0  ;;  %v653_v54 = vsel %vm2061_vm9, %v651_v52, 0.0  ;;  %vm2063_vm11 = vmmov %vm2062_vm6  ;;  %vm2065_vm1 = vnez %v2028_v27  ;;  %vm2066_vm9 = vcmp.lt.s32.totalorder %v1568_v6, 111 }
 0x252   : > { %v656_v55 = vrot.slane %v652_v53, 2  ;;  %v657_v56 = vrot.slane %v653_v54, 2  ;;  %v555_v57 = vpop.permute.xlu0 %554  ;;  %vm2067_vm15 = vmmov %vm2066_vm9 }
 0x253   : > { %v557_v60 = vpop.permute.xlu1 %556 }
 0x254   : > { %660 = vst [vmem:[#allocation2 + $0x10] sm:$0xc0] %v656_v55  ;;  %661 = vst [vmem:[#allocation2 + $0x18] sm:$0xc0] %v657_v56  ;;  %v558_v61 = vsel %vm2062_vm6, %v555_v57, %v557_v60  ;;  %v559_v62 = vsel %vm2063_vm11, %v557_v60, %v555_v57  ;;  %vm686_vm6 = vcmask 1042432   ;;  %vm2069_vm11 = vcmp.lt.s32.totalorder %v1568_v6, 16 }
 0x255   : > { %v560_v63 = vsel %vm2064_vm0, %v559_v62, 0.0  ;;  %v561_v1 = vsel %vm2065_vm1, %v558_v61, 0.0 }
 0x256   : > { %562 = vst [vmem:[#allocation2] sm:$0x3] %v560_v63  ;;  %563 = vst [vmem:[#allocation2 + $0x8] sm:$0x3] %v561_v1  ;;  %v663_v2 = vpop.permute.xlu0 %662 }
 0x257   : > { %v665_v7 = vpop.permute.xlu1 %664 }
 0x258   : > { %v666_v8 = vsel %vm2066_vm9, %v663_v2, %v665_v7  ;;  %v667_v9 = vsel %vm2067_vm15, %v665_v7, %v663_v2  ;;  %vm2068_vm15 = vnez %v2016_v3  ;;  %vm2004_vm9 = vcmask 154624  }
 0x259   : > { %v668_v10 = vsel %vm1725_vm7, %v666_v8, 0.0  ;;  %v669_v11 = vsel %vm1733_vm8, %v667_v9, 0.0 }
 0x25a   : > { %670 = vst [vmem:[#allocation2 + $0x20] sm:$0x3] %v668_v10  ;;  %671 = vst [vmem:[#allocation2 + $0x28] sm:$0x3] %v669_v11 }
 0x25b   : > { %v679_v12 = vld [vmem:[#allocation2 + $0x18] sm:$0xff]  ;;  %v678_v20 = vld [vmem:[#allocation2 + $0x10] sm:$0xff] }
 0x25d   : > { %v677_v17 = vld [vmem:[#allocation2 + $0x8] sm:$0xff]  ;;  %v676_v18 = vld [vmem:[#allocation2] sm:$0xff] }
 0x25e   : > { %v1132_v21 = vpack.c.bf16 %v679_v12, %v677_v17  ;;  %v1134_v22 = vpack.c.bf16 %v678_v20, %v676_v18 }
 0x260   : > { %1133 = vmatprep.subr.bf16.mxu1 %v1132_v21 }
 0x261   : > { %1135 = vmatpush1.bf16.msra.mxu1 %v1134_v22  ;;  %v681_v23 = vld [vmem:[#allocation2 + $0x28] sm:$0x7]  ;;  %v680_v25 = vld [vmem:[#allocation2 + $0x20] sm:$0x7] }
 0x262   : > { %1110 = vmatprep.subr.msk.mxu1 %vm686_vm6, %v681_v23  ;;  %884 = vst.msk [vmem:[#allocation2 + $0x22] ss:$8 sm:$0x3] %vm2068_vm15, %v1342_v4  ;;  %vm2070_vm15 = vmmov %vm2069_vm11 }
 0x265   : > { %1111 = vmatpush1.msk.msra.mxu1 %vm686_vm6, %v680_v25 }
 0x266   : > { %1112 = vmatmul.mubr.msk.f32.vlgmr.msra.gmra.mrb[0].mxu1 %vm2004_vm9, %v675_v26  ;;  %vm2071_vm9 = vcmp.lt.s32.totalorder %v1568_v6, 15 }
 0x267   : > { %966 = vmatprep.mubr.f32.mxu1 %v1346_v5 }
 0x339   : > { %v759_v32 = vpop.f32.mrb[0].mxu1 }
 0x33a   : > { %v764_v33 = vmax.f32 %v759_v32, 0.0  ;;  %v761_v34 = vpop.f32.mrb[1].mxu1 }
 0x33b   : > { %v765_v35 = vmax.f32 %v761_v34, 0.0 }
 0x33c   : > { %824 = vst [vmem:[#allocation2 + $0x10] sm:$0x3] %v764_v33  ;;  %776 = vrot.lane.b32.xlu0 %v764_v33, %s1338_s13 }
 0x33d   : > { %825 = vst [vmem:[#allocation2 + $0x18] sm:$0x3] %v765_v35  ;;  %778 = vrot.lane.b32.xlu1 %v765_v35, %s1338_s13  ;;  %s1123_s13 = sshll.u32 %s1399_s22, 7  ;;  %s1347_s22 = smov [#allocation8]  }
 0x340   : > { %792 = vrot.lane.b32.xlu0 %v764_v33, %s1340_s29 }
 0x341   : > { %794 = vrot.lane.b32.xlu1 %v765_v35, %s1340_s29 }
 0x344   : > { %808 = vrot.lane.b32.xlu0 %v764_v33, %s1337_s10 }
 0x345   : > { %810 = vrot.lane.b32.xlu1 %v765_v35, %s1337_s10 }
 0x348   : > { %826 = vrot.lane.b32.xlu0 %v764_v33, %s1341_s25 }
 0x349   : > { %828 = vrot.lane.b32.xlu1 %v765_v35, %s1341_s25 }
 0x34c   : > { %842 = vrot.lane.b32.xlu0 %v764_v33, %s1344_s7 }
 0x34d   : > { %844 = vrot.lane.b32.xlu1 %v765_v35, %s1344_s7  ;;  %s1934_s7 = scalar_lea.hbm %s1983_s5, %s1123_s13 }
 0x350   : > { %858 = vrot.lane.b32.xlu0 %v764_v33, %s1343_s26 }
 0x351   : > { %860 = vrot.lane.b32.xlu1 %v765_v35, %s1343_s26 }
 0x354   : > { %766 = vrot.lane.b32.xlu0 %v764_v33, %s1339_s12 }
 0x355   : > { %768 = vrot.lane.b32.xlu1 %v765_v35, %s1339_s12  ;;  %s278_s12 = scalar_lea.vmem [#allocation8], %s1529_s16  ;;  %s1267_s16 = sshll.u32 %s1347_s22, 4  ;;  %s1268_s16 = int_to_ptr.vmem [resolvable:$false] %s1267_s16 }
 0x356   : > { %s1001_s29 = sshll.u32 %s278_s12, 4  ;;  %s1269_s28 = scalar_lea.vmem %s1268_s16, 256  ;;  %s1936_s29 = int_to_ptr.vmem [resolvable:$true] %s1001_s29 }
 0x357   : > { %p1270_p8 = scmp.lt.s32.totalorder %s1936_s29, %s1268_s16 }
 0x358   : > { %874 = vrot.lane.b32.xlu0 %v764_v33, %s1345_s9 }
 0x359   : > { %876 = vrot.lane.b32.xlu1 %v765_v35, %s1345_s9  ;;  %s1263_s9 = scalar_lea.vmem %s1936_s29, 128 }
 0x35a   : > { %p1264_p13 = scmp.ne.s32.totalorder %s1936_s29, %s1263_s9  ;;  %p1271_p9 = scmp.lt.s32.totalorder %s1269_s28, %s1263_s9 }
 0x35c   : > { %p1265_p7 = pnand %p1264_p13, %p2090_p3  ;;  %p1272_p0 = por %p1271_p9, %p1270_p8 }
 0x35e   : > { %p1266_p5 = pneg %p1265_p7 }
 0x360   : > { %p1273_p1 = pnand %p1272_p0, %p1266_p5 }
 0x3ae   : > { %v777_v3 = vpop.permute.xlu0 %776 }
 0x3af   : > { %v779_v4 = vpop.permute.xlu1 %778 }
 0x3b0   : > { %v780_v5 = vsel %vm2069_vm11, %v777_v3, %v779_v4  ;;  %v781_v36 = vsel %vm2070_vm15, %v779_v4, %v777_v3  ;;  %vm2072_vm11 = vmmov %vm2071_vm9 }
 0x3b1   : > { %v782_v37 = vsel %vm1586_vm4, %v781_v36, 0.0  ;;  %v783_v38 = vsel %vm1590_vm5, %v780_v5, 0.0  ;;  %vm2073_vm4 = vcmp.lt.s32.totalorder %v1568_v6, 1 }
 0x3b2   : > { %v786_v39 = vrot.slane %v782_v37, 6  ;;  %v787_v41 = vrot.slane %v783_v38, 6  ;;  %v793_v42 = vpop.permute.xlu0 %792  ;;  %vm2074_vm5 = vmmov %vm2073_vm4  ;;  %v975_v38 = vld [vmem:[%s238_s8] sm:$0xff]  ;;  %s987_s8 = scalar_lea.sflag [#allocation5], %s1526_s14 }
 0x3b3   : > { %v795_v44 = vpop.permute.xlu1 %794 }
 0x3b4   : > { %790 = vst [vmem:[#allocation2] sm:$0xc] %v786_v39  ;;  %791 = vst [vmem:[#allocation2 + $0x8] sm:$0xc] %v787_v41  ;;  %v796_v45 = vsel %vm2071_vm9, %v793_v42, %v795_v44  ;;  %v797_v46 = vsel %vm2072_vm11, %v795_v44, %v793_v42  ;;  %vm2079_vm9 = vnez %v2042_v0  ;;  %vm2083_vm11 = vnez %v2038_v58 }
 0x3b5   : > { %v798_v47 = vsel %vm1649_vm13, %v797_v46, 0.0  ;;  %v799_v16 = vsel %vm1657_vm14, %v796_v45, 0.0  ;;  %vm2075_vm13 = vcmp.lt.s32.totalorder %v1568_v6, 127  ;;  %v977_v41 = vcombine.high %v975_v38, %v975_v38 }
 0x3b6   : > { %v802_v19 = vrot.slane %v798_v47, 4  ;;  %v803_v48 = vrot.slane %v799_v16, 4  ;;  %v809_v49 = vpop.permute.xlu0 %808  ;;  %vm2076_vm14 = vmmov %vm2075_vm13 }
 0x3b7   : > { %v811_v50 = vpop.permute.xlu1 %810 }
 0x3b8   : > { %806 = vst [vmem:[#allocation2] sm:$0x30] %v802_v19  ;;  %807 = vst [vmem:[#allocation2 + $0x8] sm:$0x30] %v803_v48  ;;  %v812_v51 = vsel %vm2073_vm4, %v809_v49, %v811_v50  ;;  %v813_v52 = vsel %vm2074_vm5, %v811_v50, %v809_v49  ;;  %vm2084_vm4 = vnez %v2040_v59  ;;  %vm2085_vm5 = vcmp.lt.s32.totalorder %v1568_v6, 17 }
 0x3b9   : > { %v814_v53 = vsel %vm1578_vm2, %v813_v52, 0.0  ;;  %v815_v40 = vsel %vm1582_vm3, %v812_v51, 0.0  ;;  %vm2077_vm2 = vcmp.lt.s32.totalorder %v1568_v6, 113 }
 0x3ba   : > { %v818_v43 = vrot.slane %v814_v53, 2  ;;  %v819_v54 = vrot.slane %v815_v40, 2  ;;  %v827_v55 = vpop.permute.xlu0 %826  ;;  %vm2078_vm3 = vmmov %vm2077_vm2 }
 0x3bb   : > { %v829_v56 = vpop.permute.xlu1 %828 }
 0x3bc   : > { %822 = vst [vmem:[#allocation2] sm:$0xc0] %v818_v43  ;;  %823 = vst [vmem:[#allocation2 + $0x8] sm:$0xc0] %v819_v54  ;;  %v830_v57 = vsel %vm2075_vm13, %v827_v55, %v829_v56  ;;  %v831_v60 = vsel %vm2076_vm14, %v829_v56, %v827_v55  ;;  %vm2087_vm14 = vcmp.lt.s32.totalorder %v1568_v6, 111 }
 0x3bd   : > { %v832_v61 = vsel %vm1620_vm10, %v830_v57, 0.0  ;;  %v833_v14 = vsel %vm1625_vm12, %v831_v60, 0.0  ;;  %vm2080_vm10 = vnez %v2044_v13  ;;  %vm2081_vm12 = vcmp.lt.s32.totalorder %v1568_v6, 112  ;;  %vm2086_vm13 = vmmov %vm2085_vm5 }
 0x3be   : > { %v836_v15 = vrot.slane %v832_v61, 6  ;;  %v837_v62 = vrot.slane %v833_v14, 6  ;;  %v843_v63 = vpop.permute.xlu0 %842  ;;  %vm2082_vm15 = vmmov %vm2081_vm12 }
 0x3bf   : > { %v845_v1 = vpop.permute.xlu1 %844 }
 0x3c0   : > { %840 = vst [vmem:[#allocation2 + $0x10] sm:$0xc] %v836_v15  ;;  %841 = vst [vmem:[#allocation2 + $0x18] sm:$0xc] %v837_v62  ;;  %v846_v2 = vsel %vm2077_vm2, %v843_v63, %v845_v1  ;;  %v847_v7 = vsel %vm2078_vm3, %v845_v1, %v843_v63 }
 0x3c1   : > { %v848_v8 = vsel %vm2079_vm9, %v846_v2, 0.0  ;;  %v849_v28 = vsel %vm2080_vm10, %v847_v7, 0.0  ;;  %vm2088_vm2 = vmmov %vm2087_vm14 }
 0x3c2   : > { %v852_v31 = vrot.slane %v848_v8, 4  ;;  %v853_v9 = vrot.slane %v849_v28, 4  ;;  %v859_v10 = vpop.permute.xlu0 %858 }
 0x3c3   : > { %v861_v11 = vpop.permute.xlu1 %860 }
 0x3c4   : > { %856 = vst [vmem:[#allocation2 + $0x10] sm:$0x30] %v852_v31  ;;  %857 = vst [vmem:[#allocation2 + $0x18] sm:$0x30] %v853_v9  ;;  %v862_v12 = vsel %vm2081_vm12, %v859_v10, %v861_v11  ;;  %v863_v17 = vsel %vm2082_vm15, %v861_v11, %v859_v10 }
 0x3c5   : > { %v864_v18 = vsel %vm2083_vm11, %v862_v12, 0.0  ;;  %v865_v0 = vsel %vm2084_vm4, %v863_v17, 0.0 }
 0x3c6   : > { %v868_v13 = vrot.slane %v864_v18, 2  ;;  %v869_v20 = vrot.slane %v865_v0, 2  ;;  %v767_v21 = vpop.permute.xlu0 %766 }
 0x3c7   : > { %v769_v22 = vpop.permute.xlu1 %768 }
 0x3c8   : > { %872 = vst [vmem:[#allocation2 + $0x10] sm:$0xc0] %v868_v13  ;;  %873 = vst [vmem:[#allocation2 + $0x18] sm:$0xc0] %v869_v20  ;;  %v770_v23 = vsel %vm2085_vm5, %v767_v21, %v769_v22  ;;  %v771_v25 = vsel %vm2086_vm13, %v769_v22, %v767_v21 }
 0x3c9   : > { %v772_v26 = vsel %vm2064_vm0, %v771_v25, 0.0  ;;  %v773_v58 = vsel %vm2065_vm1, %v770_v23, 0.0  ;;  %vm2089_vm1 = vcmask 154624  }
 0x3ca   : > { %774 = vst [vmem:[#allocation2] sm:$0x3] %v772_v26  ;;  %775 = vst [vmem:[#allocation2 + $0x8] sm:$0x3] %v773_v58  ;;  %v875_v59 = vpop.permute.xlu0 %874 }
 0x3cb   : > { %v877_v32 = vpop.permute.xlu1 %876 }
 0x3cc   : > { %v878_v33 = vsel %vm2087_vm14, %v875_v59, %v877_v32  ;;  %v879_v34 = vsel %vm2088_vm2, %v877_v32, %v875_v59 }
 0x3cd   : > { %v880_v35 = vsel %vm1725_vm7, %v878_v33, 0.0  ;;  %v881_v24 = vsel %vm1733_vm8, %v879_v34, 0.0 }
 0x3ce   : > { %882 = vst [vmem:[#allocation2 + $0x20] sm:$0x3] %v880_v35  ;;  %883 = vst [vmem:[#allocation2 + $0x28] sm:$0x3] %v881_v24 }
 0x3cf   : > { %v890_v27 = vld [vmem:[#allocation2 + $0x18] sm:$0xff]  ;;  %v889_v5 = vld [vmem:[#allocation2 + $0x10] sm:$0xff] }
 0x3d1   : > { %v888_v3 = vld [vmem:[#allocation2 + $0x8] sm:$0xff]  ;;  %v887_v4 = vld [vmem:[#allocation2] sm:$0xff] }
 0x3d2   : > { %v1136_v36 = vpack.c.bf16 %v890_v27, %v888_v3  ;;  %v1138_v37 = vpack.c.bf16 %v889_v5, %v887_v4 }
 0x3d4   : > { %1137 = vmatprep.subr.bf16.mxu1 %v1136_v36 }
 0x3d5   : > { %1139 = vmatpush1.bf16.msra.mxu1 %v1138_v37  ;;  %v892_v6 = vld [vmem:[#allocation2 + $0x28] sm:$0x7]  ;;  %v891_v30 = vld [vmem:[#allocation2 + $0x20] sm:$0x7] }
 0x3d6   : > { %1113 = vmatprep.subr.msk.mxu1 %vm686_vm6, %v892_v6 }
 0x3d9   : > { %1114 = vmatpush1.msk.msra.mxu1 %vm686_vm6, %v891_v30 }
 0x3da   : > { %1115 = vmatmul.mubr.msk.f32.vlgmr.msra.gmra.mrb[2].mxu1 %vm2089_vm1, %v886_v29 }
 0x4ad   : > { %v968_v39 = vpop.f32.mrb[2].mxu1 }
 0x4ae   : > { %v973_v42 = vmax.f32 %v968_v39, 0.0  ;;  %v970_v44 = vpop.f32.mrb[3].mxu1 }
 0x4af   : > { %v974_v45 = vmax.f32 %v970_v44, 0.0 }
 0x4b0   : > { %v979_v46 = vadd.f32 %v975_v38, %v973_v42 }
 0x4b1   : > { %v980_v47 = vadd.f32 %v977_v41, %v974_v45 }
 0x4b3   : > { %v983_v16 = vcombine.low %v979_v46, %v980_v47 }
 0x4b5   : > { %985 = vst [vmem:[%s278_s12] sm:$0xff] %v983_v16 }
 0x4b6   : > { %1276 = shalt.err (!%p1273_p1)
}
 0x4b7   : > { %s1277_s14 = scalar_lea.hbm %s1934_s7, 128  ;;  %s1281_s15 = scalar_lea.hbm %s1983_s5, 256 }
 0x4b8   : > { %p1278_p11 = scmp.ne.s32.totalorder %s1934_s7, %s1277_s14  ;;  %p1282_p4 = scmp.lt.u32.totalorder %s1934_s7, %s1983_s5 }
 0x4b9   : > { %p1283_p10 = scmp.lt.u32.totalorder %s1281_s15, %s1277_s14  ;;  %p1285_p13 = scmp.lt.u32.totalorder %s1277_s14, %s1934_s7 }
 0x4ba   : > { %p1279_p12 = pnand %p1278_p11, %p2090_p3 }
 0x4bb   : > { %p1284_p6 = por %p1283_p10, %p1282_p4 }
 0x4bc   : > { %p1280_p2 = pneg %p1279_p12 }
 0x4bd   : > { %p1286_p7 = por %p1285_p13, %p1284_p6 }
 0x4bf   : > { %p1287_p5 = pnand %p1286_p7, %p1280_p2 }
 0x4c1   : > { %1290 = shalt.err (!%p1287_p5)
}
 0x4c2   : > { %1144 = dma.vmem_to_hbm [thread:$0]  (%p2090_p3), %s1936_s29, 128, %s1934_s7, %s987_s8  }
 0x4c3 PF: > { %s1013_s13 = sand.u32 1, %s1321_s18   ;;  %p2091_p8 = scmp.ne.s32.totalorder %s2008_s6, 0 }
 0x4c4   : > { %p2092_p9 = scmp.ge.s32.totalorder %s1333_s21, 2  ;;  %s1014_s12 = scalar_lea.sflag [#allocation5], %s1013_s13 }
 0x4c6   : > { %p1154_p0 = pnand %p2092_p9, %p2091_p8 }
 0x4c8   : > { %1316 = dma.done.wait (!%p1154_p0), %s1014_s12, 128  }
 0x4c9   : > { %1318 = vsyncadd (!%p1154_p0), %s1014_s12, 4294967168  ;;  %p21_p1 = scmp.ge.s32.totalorder %s1403_s24, 4   ;;  %s2093_s18 = smov %s1325_s19 }
 0x4ca   : > { %s2094_s19 = smov %s1329_s20  ;;  %s2095_s20 = smov %s1415_s27 }
 0x4cb   : > { %s2096_s21 = smov %s1403_s24  ;;  %23 = sbr.rel (!%p21_p1) target bundleno = 7 (0x7), region = 100 }
 0x4d2   :  { %1019 = vsyncpa [#allocation4], 1 }
 0x4d3   :  { %1021 = vsyncpa [#allocation4 + $0x1], 1 }
 0x4d4   :  { %1022 = vsyncpa [#allocation7], 1 }
 0x4d5   :  { %1024 = vsyncpa [#allocation7 + $0x1], 1 }
 0x4d6   :  { %1025 = vsyncpa [#allocation5], 1 }
 0x4d7   :  { %1027 = vsyncpa [#allocation5 + $0x1], 1 }

</bundles_post_ra>
